<compile_context>
chip_gen: v7x
topology: tpu7x:2x2x1
jax: 0.10.0
libtpu: 0.0.40
codegen_flags: <defaults>
</compile_context>

<pallas_src>
import jax
import jax.numpy as jnp
import numpy as np
from jax.experimental import pallas as pl
from jax.experimental.pallas import tpu as pltpu  # noqa: F401  (kept for TPU-specific tuning hooks)

# ---------------- configuration (small, consistent with the module) ---------
B, CIN, H, W = 2, 4, 16, 16          # input image: NCHW
N_CLASSES = 80
NO = 4 + N_CLASSES                   # 4 box coords + class scores
N = H * W                            # predictions per image (256)
MAX_WH = 640.0                       # -> ONNX_ORT patch path of End2End


# ---------------- fused kernel: head + pre-NMS (single block) ----------------
def fused_kernel(x_ref, wb_ref, out_ref):
    # x_ref:   (B*CIN, N) f32  -- batch folded onto sublanes, (8,128)-aligned
    # wb_ref:  (NO, CIN+1) f32 -- [weight | bias], rows 2:4 pre-scaled by 0.5
    # out_ref: (B, 10, N)  f32 -- [xyxy(4) | nmsbox(4) | max_score(1) | cat(1)]
    bsz = out_ref.shape[0]
    cin = wb_ref.shape[1] - 1
    n_cls = wb_ref.shape[0] - 4
    n = x_ref.shape[1]

    x = x_ref[...]                               # one aligned load of the whole input
    wb = wb_ref[...]                             # (NO, CIN+1)
    bias = wb[:, cin:cin + 1]                    # (NO, 1)

    # class-id iota hoisted out of the batch loop (broadcast_in_dim is not CSE'd)
    cls_iota = jax.lax.broadcasted_iota(jnp.int32, (n_cls, n), 0)

    for b in range(bsz):                         # static unroll (B = 2)
        xb = x[b * cin:(b + 1) * cin, :]                          # (CIN, N)

        # 1x1-conv head as CIN broadcast FMAs (pure VPU; MXU intentionally unused).
        pred = bias + wb[:, 0:1] * xb[0:1, :]                     # (NO, N)
        for c in range(1, cin):
            pred = pred + wb[:, c:c + 1] * xb[c:c + 1, :]

        # xywh -> xyxy.  The 0.5 factor was folded into wb rows 2:4 at parameter
        # prep time, so this is pure add/sub on two (2, N) slabs.
        ctr = pred[0:2, :]                                        # (2, N) cx, cy
        half = pred[2:4, :]                                       # (2, N) w/2, h/2
        xyxy = jnp.concatenate([ctr - half, ctr + half], axis=0)  # (4, N)

        # class max / argmax over the class (sublane) axis.
        # NOTE: the (scores >= max_score) mask + min-index reduce returns the FIRST
        # occurrence of the max (matches torch/jnp argmax).  It relies on exact
        # float equality with a max reduced from the SAME `scores` values -- keep
        # both reductions fed from `scores` if refactoring.
        scores = pred[4:, :]                                      # (n_cls, N)
        max_score = jnp.max(scores, axis=0, keepdims=True)        # (1, N)
        cat = jnp.min(
            jnp.where(scores >= max_score, cls_iota, jnp.int32(n_cls)),
            axis=0, keepdims=True)                                # (1, N) int32
        cat_f = cat.astype(jnp.float32)                           # exact: 0..79
        nmsbox = xyxy + cat_f * MAX_WH                            # (4, N)

        # one lane-dense (10, N) slab per batch element, written once
        out_ref[b] = jnp.concatenate([xyxy, nmsbox, max_score, cat_f], axis=0)


# ---------------- one-time parameter folding (outside the per-call path) ----
def prepare_params(wt, b_col):
    """Merge 1x1-conv weight (NO, CIN) and bias (NO, 1) into a single (NO, CIN+1)
    slab, pre-scaling the w/h rows (2:4) by 0.5 so the in-kernel xywh->xyxy
    conversion is pure add/sub.  Call ONCE at parameter-preparation time."""
    wb = jnp.concatenate([wt.astype(jnp.float32), b_col.astype(jnp.float32)], axis=1)
    wb = wb.at[2:4, :].multiply(0.5)
    return wb


# ---------------- wrapper -----------------------------------------------------
def end2end_forward(x_img, wb):
    """x_img: (B, CIN, H, W); wb: (NO, CIN+1) from prepare_params.

    Returns lane-dense tensors (same data as torch's (B, N, C), transposed):
      bboxes (B, 4, N), nmsbox (B, 4, N), max_score (B, 1, N), category_id (B, 1, N) i32.
    """
    bsz, cin, h, w_ = x_img.shape
    n = h * w_
    no = wb.shape[0]
    x_flat = x_img.reshape(bsz * cin, n)          # pure reshape -> (8, 256), aligned

    slab = pl.pallas_call(
        fused_kernel,
        out_shape=jax.ShapeDtypeStruct((bsz, 10, n), jnp.float32),
        grid=(1,),                                # single grid step: whole problem in one block
        in_specs=[
            pl.BlockSpec((bsz * cin, n), lambda i: (0, 0)),
            pl.BlockSpec((no, cin + 1), lambda i: (0, 0)),
        ],
        out_specs=pl.BlockSpec((bsz, 10, n), lambda i: (0, 0, 0)),
    )(x_flat, wb)

    bboxes = slab[:, 0:4, :]
    nmsbox = slab[:, 4:8, :]
    max_score = slab[:, 8:9, :]
    category_id = slab[:, 9:10, :].astype(jnp.int32)
    return bboxes, nmsbox, max_score, category_id
    # TODO(synk): NMS selection (random stub in PyTorch) and the final
    # selected_boxes gather are not reproducible; pre-NMS tensors are returned.


# ---------------- reference (pure JAX) for correctness check -----------------
def end2end_ref(x_img, wt, b_col):
    bsz, cin, h, w_ = x_img.shape
    n = h * w_
    x_nc = jnp.transpose(x_img.reshape(bsz, cin, n), (0, 2, 1))      # (B, N, CIN)
    pred = jnp.einsum("bnc,oc->bno", x_nc, wt,
                      precision=jax.lax.Precision.HIGHEST) + b_col[:, 0]
    convert_matrix = jnp.array(
        [[1.0, 0.0, 1.0, 0.0],
         [0.0, 1.0, 0.0, 1.0],
         [-0.5, 0.0, 0.5, 0.0],
         [0.0, -0.5, 0.0, 0.5]],
        dtype=jnp.float32,
    )
    xyxy = jnp.einsum("bnk,kj->bnj", pred[..., 0:4], convert_matrix,
                      precision=jax.lax.Precision.HIGHEST)
    scores = pred[..., 4:]
    max_score = jnp.max(scores, axis=-1, keepdims=True)
    cat = jnp.argmax(scores, axis=-1, keepdims=True).astype(jnp.int32)
    nmsbox = xyxy + cat.astype(jnp.float32) * MAX_WH
    t = lambda a: jnp.transpose(a, (0, 2, 1))                        # -> (B, C, N)
    return t(xyxy), t(nmsbox), t(max_score), t(cat)


if __name__ == "__main__":
    key = jax.random.PRNGKey(0)
    kx, kw, kb = jax.random.split(key, 3)

    x_img = jax.random.normal(kx, (B, CIN, H, W), dtype=jnp.float32)
    wt = jax.random.normal(kw, (NO, CIN), dtype=jnp.float32) * 0.1      # 1x1-conv weight
    b_col = jax.random.normal(kb, (NO, 1), dtype=jnp.float32) * 0.1     # 1x1-conv bias

    wb = prepare_params(wt, b_col)                                      # one-time folding

    outs = end2end_forward(x_img, wb)
    outs = jax.block_until_ready(outs)

    refs = end2end_ref(x_img, wt, b_col)
    for o, r in zip(outs, refs):
        np.testing.assert_allclose(
            np.asarray(o, dtype=np.float32),
            np.asarray(r, dtype=np.float32),
            rtol=1e-5, atol=1e-5,
        )
    print("KERNEL_OK")
</pallas_src>

<mosaic_0001>
module attributes {stable_mosaic.version = 11 : i64} {
  func.func @fused_kernel(%arg0: i32, %arg1: memref<8x256xf32, #tpu.memory_space<vmem>>, %arg2: memref<84x5xf32, #tpu.memory_space<vmem>>, %arg3: memref<2x10x256xf32, #tpu.memory_space<vmem>>) attributes {dimension_semantics = [#tpu.dimension_semantics<arbitrary>], iteration_bounds = array<i64: 1>, scalar_prefetch = 0 : i64, scratch_operands = 0 : i64, tpu.core_type = #tpu.core_type<tc>, window_params = [{pipeline_mode = #tpu.pipeline_mode<synchronous>, transform_indices = @transform_0, window_bounds = array<i64: 8, 256>}, {pipeline_mode = #tpu.pipeline_mode<synchronous>, transform_indices = @transform_1, window_bounds = array<i64: 84, 5>}, {pipeline_mode = #tpu.pipeline_mode<synchronous>, transform_indices = @transform_2, window_bounds = array<i64: 2, 10, 256>}]} {
    %c0 = arith.constant 0 : index
    %c0_0 = arith.constant 0 : index
    %0 = vector.load %arg1[%c0, %c0_0] : memref<8x256xf32, #tpu.memory_space<vmem>>, vector<8x256xf32>
    %c0_1 = arith.constant 0 : index
    %c0_2 = arith.constant 0 : index
    %1 = vector.load %arg2[%c0_1, %c0_2] : memref<84x5xf32, #tpu.memory_space<vmem>>, vector<84x5xf32>
    %2 = vector.extract_strided_slice %1 {offsets = [0, 4], sizes = [84, 1], strides = [1, 1]} : vector<84x5xf32> to vector<84x1xf32>
    %3 = tpu.iota {dimensions = array<i32: 0>} : vector<80x256xi32>
    %4 = vector.extract_strided_slice %0 {offsets = [0, 0], sizes = [4, 256], strides = [1, 1]} : vector<8x256xf32> to vector<4x256xf32>
    %5 = vector.extract_strided_slice %1 {offsets = [0, 0], sizes = [84, 1], strides = [1, 1]} : vector<84x5xf32> to vector<84x1xf32>
    %6 = vector.extract_strided_slice %4 {offsets = [0, 0], sizes = [1, 256], strides = [1, 1]} : vector<4x256xf32> to vector<1x256xf32>
    %7 = vector.broadcast %5 : vector<84x1xf32> to vector<84x256xf32>
    %8 = vector.broadcast %6 : vector<1x256xf32> to vector<84x256xf32>
    %9 = arith.mulf %7, %8 : vector<84x256xf32>
    %10 = vector.broadcast %2 : vector<84x1xf32> to vector<84x256xf32>
    %11 = arith.addf %10, %9 : vector<84x256xf32>
    %12 = vector.extract_strided_slice %1 {offsets = [0, 1], sizes = [84, 1], strides = [1, 1]} : vector<84x5xf32> to vector<84x1xf32>
    %13 = vector.extract_strided_slice %4 {offsets = [1, 0], sizes = [1, 256], strides = [1, 1]} : vector<4x256xf32> to vector<1x256xf32>
    %14 = vector.broadcast %12 : vector<84x1xf32> to vector<84x256xf32>
    %15 = vector.broadcast %13 : vector<1x256xf32> to vector<84x256xf32>
    %16 = arith.mulf %14, %15 : vector<84x256xf32>
    %17 = arith.addf %11, %16 : vector<84x256xf32>
    %18 = vector.extract_strided_slice %1 {offsets = [0, 2], sizes = [84, 1], strides = [1, 1]} : vector<84x5xf32> to vector<84x1xf32>
    %19 = vector.extract_strided_slice %4 {offsets = [2, 0], sizes = [1, 256], strides = [1, 1]} : vector<4x256xf32> to vector<1x256xf32>
    %20 = vector.broadcast %18 : vector<84x1xf32> to vector<84x256xf32>
    %21 = vector.broadcast %19 : vector<1x256xf32> to vector<84x256xf32>
    %22 = arith.mulf %20, %21 : vector<84x256xf32>
    %23 = arith.addf %17, %22 : vector<84x256xf32>
    %24 = vector.extract_strided_slice %1 {offsets = [0, 3], sizes = [84, 1], strides = [1, 1]} : vector<84x5xf32> to vector<84x1xf32>
    %25 = vector.extract_strided_slice %4 {offsets = [3, 0], sizes = [1, 256], strides = [1, 1]} : vector<4x256xf32> to vector<1x256xf32>
    %26 = vector.broadcast %24 : vector<84x1xf32> to vector<84x256xf32>
    %27 = vector.broadcast %25 : vector<1x256xf32> to vector<84x256xf32>
    %28 = arith.mulf %26, %27 : vector<84x256xf32>
    %29 = arith.addf %23, %28 : vector<84x256xf32>
    %30 = vector.extract_strided_slice %29 {offsets = [0, 0], sizes = [2, 256], strides = [1, 1]} : vector<84x256xf32> to vector<2x256xf32>
    %31 = vector.extract_strided_slice %29 {offsets = [2, 0], sizes = [2, 256], strides = [1, 1]} : vector<84x256xf32> to vector<2x256xf32>
    %32 = arith.subf %30, %31 : vector<2x256xf32>
    %33 = arith.addf %30, %31 : vector<2x256xf32>
    %34 = tpu.concatenate %32, %33 in 0 : vector<2x256xf32>, vector<2x256xf32> -> vector<4x256xf32>
    %35 = vector.extract_strided_slice %29 {offsets = [4, 0], sizes = [80, 256], strides = [1, 1]} : vector<84x256xf32> to vector<80x256xf32>
    %cst = arith.constant dense<0xFF800000> : vector<256xf32>
    %36 = vector.multi_reduction <maximumf>, %35, %cst [0] : vector<80x256xf32> to vector<256xf32>
    %37 = vector.shape_cast %36 : vector<256xf32> to vector<1x256xf32>
    %38 = vector.broadcast %37 : vector<1x256xf32> to vector<80x256xf32>
    %39 = arith.cmpf oge, %35, %38 : vector<80x256xf32>
    %c80_i32 = arith.constant 80 : i32
    %40 = vector.broadcast %c80_i32 : i32 to vector<80x256xi32>
    %41 = arith.select %39, %3, %40 : vector<80x256xi1>, vector<80x256xi32>
    %cst_3 = arith.constant dense<2147483647> : vector<256xi32>
    %42 = vector.multi_reduction <minsi>, %41, %cst_3 [0] : vector<80x256xi32> to vector<256xi32>
    %43 = vector.shape_cast %42 : vector<256xi32> to vector<1x256xi32>
    %44 = arith.sitofp %43 : vector<1x256xi32> to vector<1x256xf32>
    %cst_4 = arith.constant 6.400000e+02 : f32
    %45 = vector.broadcast %cst_4 : f32 to vector<1x256xf32>
    %46 = arith.mulf %44, %45 : vector<1x256xf32>
    %47 = vector.broadcast %46 : vector<1x256xf32> to vector<4x256xf32>
    %48 = arith.addf %34, %47 : vector<4x256xf32>
    %49 = tpu.concatenate %34, %48, %37, %44 in 0 : vector<4x256xf32>, vector<4x256xf32>, vector<1x256xf32>, vector<1x256xf32> -> vector<10x256xf32>
    %c0_5 = arith.constant 0 : index
    %c0_6 = arith.constant 0 : index
    %c0_7 = arith.constant 0 : index
    %50 = vector.load %arg3[%c0_5, %c0_6, %c0_7] : memref<2x10x256xf32, #tpu.memory_space<vmem>>, vector<1x10x256xf32>
    %51 = vector.shape_cast %50 : vector<1x10x256xf32> to vector<10x256xf32>
    %52 = vector.shape_cast %49 : vector<10x256xf32> to vector<1x10x256xf32>
    tpu.vector_store %arg3[%c0_5, %c0_6, %c0_7], %52 {strides = array<i32>} : memref<2x10x256xf32, #tpu.memory_space<vmem>>, vector<1x10x256xf32>,
    %53 = vector.extract_strided_slice %0 {offsets = [4, 0], sizes = [4, 256], strides = [1, 1]} : vector<8x256xf32> to vector<4x256xf32>
    %54 = vector.extract_strided_slice %1 {offsets = [0, 0], sizes = [84, 1], strides = [1, 1]} : vector<84x5xf32> to vector<84x1xf32>
    %55 = vector.extract_strided_slice %53 {offsets = [0, 0], sizes = [1, 256], strides = [1, 1]} : vector<4x256xf32> to vector<1x256xf32>
    %56 = vector.broadcast %54 : vector<84x1xf32> to vector<84x256xf32>
    %57 = vector.broadcast %55 : vector<1x256xf32> to vector<84x256xf32>
    %58 = arith.mulf %56, %57 : vector<84x256xf32>
    %59 = vector.broadcast %2 : vector<84x1xf32> to vector<84x256xf32>
    %60 = arith.addf %59, %58 : vector<84x256xf32>
    %61 = vector.extract_strided_slice %1 {offsets = [0, 1], sizes = [84, 1], strides = [1, 1]} : vector<84x5xf32> to vector<84x1xf32>
    %62 = vector.extract_strided_slice %53 {offsets = [1, 0], sizes = [1, 256], strides = [1, 1]} : vector<4x256xf32> to vector<1x256xf32>
    %63 = vector.broadcast %61 : vector<84x1xf32> to vector<84x256xf32>
    %64 = vector.broadcast %62 : vector<1x256xf32> to vector<84x256xf32>
    %65 = arith.mulf %63, %64 : vector<84x256xf32>
    %66 = arith.addf %60, %65 : vector<84x256xf32>
    %67 = vector.extract_strided_slice %1 {offsets = [0, 2], sizes = [84, 1], strides = [1, 1]} : vector<84x5xf32> to vector<84x1xf32>
    %68 = vector.extract_strided_slice %53 {offsets = [2, 0], sizes = [1, 256], strides = [1, 1]} : vector<4x256xf32> to vector<1x256xf32>
    %69 = vector.broadcast %67 : vector<84x1xf32> to vector<84x256xf32>
    %70 = vector.broadcast %68 : vector<1x256xf32> to vector<84x256xf32>
    %71 = arith.mulf %69, %70 : vector<84x256xf32>
    %72 = arith.addf %66, %71 : vector<84x256xf32>
    %73 = vector.extract_strided_slice %1 {offsets = [0, 3], sizes = [84, 1], strides = [1, 1]} : vector<84x5xf32> to vector<84x1xf32>
    %74 = vector.extract_strided_slice %53 {offsets = [3, 0], sizes = [1, 256], strides = [1, 1]} : vector<4x256xf32> to vector<1x256xf32>
    %75 = vector.broadcast %73 : vector<84x1xf32> to vector<84x256xf32>
    %76 = vector.broadcast %74 : vector<1x256xf32> to vector<84x256xf32>
    %77 = arith.mulf %75, %76 : vector<84x256xf32>
    %78 = arith.addf %72, %77 : vector<84x256xf32>
    %79 = vector.extract_strided_slice %78 {offsets = [0, 0], sizes = [2, 256], strides = [1, 1]} : vector<84x256xf32> to vector<2x256xf32>
    %80 = vector.extract_strided_slice %78 {offsets = [2, 0], sizes = [2, 256], strides = [1, 1]} : vector<84x256xf32> to vector<2x256xf32>
    %81 = arith.subf %79, %80 : vector<2x256xf32>
    %82 = arith.addf %79, %80 : vector<2x256xf32>
    %83 = tpu.concatenate %81, %82 in 0 : vector<2x256xf32>, vector<2x256xf32> -> vector<4x256xf32>
    %84 = vector.extract_strided_slice %78 {offsets = [4, 0], sizes = [80, 256], strides = [1, 1]} : vector<84x256xf32> to vector<80x256xf32>
    %cst_8 = arith.constant dense<0xFF800000> : vector<256xf32>
    %85 = vector.multi_reduction <maximumf>, %84, %cst_8 [0] : vector<80x256xf32> to vector<256xf32>
    %86 = vector.shape_cast %85 : vector<256xf32> to vector<1x256xf32>
    %87 = vector.broadcast %86 : vector<1x256xf32> to vector<80x256xf32>
    %88 = arith.cmpf oge, %84, %87 : vector<80x256xf32>
    %c80_i32_9 = arith.constant 80 : i32
    %89 = vector.broadcast %c80_i32_9 : i32 to vector<80x256xi32>
    %90 = arith.select %88, %3, %89 : vector<80x256xi1>, vector<80x256xi32>
    %cst_10 = arith.constant dense<2147483647> : vector<256xi32>
    %91 = vector.multi_reduction <minsi>, %90, %cst_10 [0] : vector<80x256xi32> to vector<256xi32>
    %92 = vector.shape_cast %91 : vector<256xi32> to vector<1x256xi32>
    %93 = arith.sitofp %92 : vector<1x256xi32> to vector<1x256xf32>
    %cst_11 = arith.constant 6.400000e+02 : f32
    %94 = vector.broadcast %cst_11 : f32 to vector<1x256xf32>
    %95 = arith.mulf %93, %94 : vector<1x256xf32>
    %96 = vector.broadcast %95 : vector<1x256xf32> to vector<4x256xf32>
    %97 = arith.addf %83, %96 : vector<4x256xf32>
    %98 = tpu.concatenate %83, %97, %86, %93 in 0 : vector<4x256xf32>, vector<4x256xf32>, vector<1x256xf32>, vector<1x256xf32> -> vector<10x256xf32>
    %c1 = arith.constant 1 : index
    %c0_12 = arith.constant 0 : index
    %c0_13 = arith.constant 0 : index
    %99 = vector.load %arg3[%c1, %c0_12, %c0_13] : memref<2x10x256xf32, #tpu.memory_space<vmem>>, vector<1x10x256xf32>
    %100 = vector.shape_cast %99 : vector<1x10x256xf32> to vector<10x256xf32>
    %101 = vector.shape_cast %98 : vector<10x256xf32> to vector<1x10x256xf32>
    tpu.vector_store %arg3[%c1, %c0_12, %c0_13], %101 {strides = array<i32>} : memref<2x10x256xf32, #tpu.memory_space<vmem>>, vector<1x10x256xf32>,
    return
  }
  func.func @transform_0(%arg0: i32) -> (i32, i32) {
    %c0_i32 = arith.constant 0 : i32
    %c0_i32_0 = arith.constant 0 : i32
    %c0_i32_1 = arith.constant 0 : i32
    return %c0_i32, %c0_i32_0 : i32, i32
  }
  func.func @transform_1(%arg0: i32) -> (i32, i32) {
    %c0_i32 = arith.constant 0 : i32
    %c0_i32_0 = arith.constant 0 : i32
    %c0_i32_1 = arith.constant 0 : i32
    return %c0_i32, %c0_i32_0 : i32, i32
  }
  func.func @transform_2(%arg0: i32) -> (i32, i32, i32) {
    %c0_i32 = arith.constant 0 : i32
    %c0_i32_0 = arith.constant 0 : i32
    %c0_i32_1 = arith.constant 0 : i32
    %c0_i32_2 = arith.constant 0 : i32
    return %c0_i32, %c0_i32_0, %c0_i32_1 : i32, i32, i32
  }
}

</mosaic_0001>

<bundles_post_ra>
// kernel: tpu_custom_call.1
= control target key start
LH: loop header
LB: loop body
LE: loop exit
PB: predicated region body
PF: predicated region fallthrough
CT: control target
= control target key end

     0   :  { %v1101_v0 = vmov 0   ;;  %v1102_v12 = vmov 4   ;;  %v1103_v13 = vmov 1   ;;  %v1104_v14 = vmov 2   ;;  %s2474_s1 = inlined_call_operand.vmem [shape: f32[84,5], index: 1, kind: input, shape index: {}]   ;;  %s2475_s0 = inlined_call_operand.vmem [shape: f32[8,256], index: 0, kind: input, shape index: {}]   ;;  %s2476_s2 = inlined_call_operand.vmem [shape: f32[2,10,256], index: 2, kind: output, shape index: {}]  }
   0x1   :  { %1080 = vset.pattern.permute.xlu1 %v1101_v0  ;;  %1079 = vset.pattern.permute.xlu0 %v1101_v0  ;;  %v1124_v1 = vld [vmem:[%s2474_s1 + $0x10] sm:$0xff]  ;;  %v13_v2 = vld [vmem:[%s2474_s1] sm:$0xff]  ;;  %v1133_v3 = vld [vmem:[%s2474_s1 + $0x18] sm:$0xff]  ;;  %v1105_v15 = vmov 3   ;;  %v24_v18 = vlaneseq  ;;  %vm2513_vm0 = vcmask 1047556   ;;  %vm2512_vm1 = vcmask 1043456  }
   0x2   :  { %47 = vperm.xlu1 %1080, %v1124_v1   ;;  %37 = vperm.xlu0 %1079, %v13_v2   ;;  %v14_v4 = vld [vmem:[%s2474_s1 + $0x8] sm:$0xff]  ;;  %v1147_v6 = vld [vmem:[%s2474_s1 + $0x20] sm:$0xff]  ;;  %v1154_v7 = vld [vmem:[%s2474_s1 + $0x38] sm:$0xff] }
   0x3   :  { %v1142_v5 = vld [vmem:[%s2474_s1 + $0x28] sm:$0xff]  ;;  %v1159_v8 = vld [vmem:[%s2474_s1 + $0x30] sm:$0xff]  ;;  %v1171_v10 = vld [vmem:[%s2474_s1 + $0x40] sm:$0xff]  ;;  %v1217_v21 = vshrl.u32 %v24_v18, 7 }
   0x4   :  { %v1166_v9 = vld [vmem:[%s2474_s1 + $0x48] sm:$0xff]  ;;  %v1178_v11 = vld [vmem:[%s2474_s1 + $0x50] sm:$0xf]  ;;  %v1231_v28 = vld [vmem:[%s2475_s0] sm:$0xff] }
   0x5   :  { %2514 = vst [vmem:[#allocation2_spill] sm:$0xff] %v1217_v21  ;;  %v92_v24 = vsub.s32 0, %v1217_v21  ;;  %v679_v25 = vsub.s32 4, %v1217_v21  ;;  %v1236_v29 = vld [vmem:[%s2475_s0 + $0x8] sm:$0xff] }
   0x6   :  { %52 = vperm.xlu1 %1080, %v1133_v3   ;;  %42 = vperm.xlu0 %1079, %v14_v4  }
   0x7   :  { %v1240_v30 = vrot.slane %v1231_v28, %v92_v24  ;;  %v1243_v31 = vrot.slane %v1236_v29, %v92_v24  ;;  %v1246_v32 = vrot.slane %v1231_v28, %v679_v25  ;;  %v1249_v33 = vrot.slane %v1236_v29, %v679_v25 }
   0xa   :  { %62 = vperm.xlu1 %1080, %v1142_v5   ;;  %57 = vperm.xlu0 %1079, %v1147_v6  }
   0xe   :  { %72 = vperm.xlu1 %1080, %v1154_v7   ;;  %67 = vperm.xlu0 %1079, %v1159_v8  }
  0x12   :  { %82 = vperm.xlu1 %1080, %v1166_v9   ;;  %77 = vperm.xlu0 %1079, %v1171_v10  }
  0x16   :  { %1081 = vset.pattern.permute.xlu1 %v1102_v12  ;;  %87 = vperm.xlu0 %1079, %v1178_v11  }
  0x17   :  { %121 = vperm.xlu1 %1081, %v13_v2  }
  0x1a   :  { %1082 = vset.pattern.permute.xlu0 %v1102_v12 }
  0x1b   :  { %129 = vperm.xlu1 %1081, %v1124_v1   ;;  %125 = vperm.xlu0 %1082, %v14_v4  }
  0x1f   :  { %133 = vperm.xlu1 %1081, %v1133_v3   ;;  %137 = vperm.xlu0 %1082, %v1147_v6  }
  0x23   :  { %141 = vperm.xlu1 %1081, %v1142_v5   ;;  %145 = vperm.xlu0 %1082, %v1159_v8  }
  0x27   :  { %149 = vperm.xlu1 %1081, %v1154_v7   ;;  %153 = vperm.xlu0 %1082, %v1171_v10  }
  0x2b   :  { %157 = vperm.xlu1 %1081, %v1166_v9   ;;  %161 = vperm.xlu0 %1082, %v1178_v11  }
  0x2f   :  { %1083 = vset.pattern.permute.xlu1 %v1103_v13  ;;  %1084 = vset.pattern.permute.xlu0 %v1103_v13 }
  0x30   :  { %187 = vperm.xlu1 %1083, %v13_v2   ;;  %195 = vperm.xlu0 %1084, %v1124_v1  }
  0x34   :  { %1085 = vset.pattern.permute.xlu1 %v1104_v14  ;;  %199 = vperm.xlu0 %1084, %v1133_v3  }
  0x35   :  { %283 = vperm.xlu1 %1085, %v13_v2  }
  0x38   :  { %211 = vperm.xlu0 %1084, %v1159_v8  }
  0x39   :  { %1086 = vset.pattern.permute.xlu1 %v1103_v13 }
  0x3a   :  { %191 = vperm.xlu1 %1086, %v14_v4  }
  0x3c   :  { %219 = vperm.xlu0 %1084, %v1171_v10  }
  0x3e   :  { %203 = vperm.xlu1 %1086, %v1147_v6  }
  0x40   :  { %227 = vperm.xlu0 %1084, %v1178_v11  }
  0x42   :  { %1087 = vset.pattern.permute.xlu1 %v1105_v15 }
  0x43   :  { %379 = vperm.xlu1 %1087, %v13_v2  }
  0x44   :  { %1094 = vset.pattern.permute.xlu0 %v1104_v14 }
  0x45   :  { %291 = vperm.xlu0 %1094, %v1124_v1  }
  0x47   :  { %1088 = vset.pattern.permute.xlu1 %v1103_v13 }
  0x48   :  { %207 = vperm.xlu1 %1088, %v1142_v5  }
  0x49   :  { %299 = vperm.xlu0 %1094, %v1147_v6  }
  0x4c   :  { %1089 = vset.pattern.permute.xlu1 %v1104_v14 }
  0x4d   :  { %287 = vperm.xlu1 %1089, %v14_v4   ;;  %315 = vperm.xlu0 %1094, %v1171_v10  }
  0x51   :  { %295 = vperm.xlu1 %1089, %v1133_v3   ;;  %323 = vperm.xlu0 %1094, %v1178_v11  }
  0x55   :  { %1090 = vset.pattern.permute.xlu1 %v1105_v15  ;;  %1098 = vset.pattern.permute.xlu0 %v1105_v15 }
  0x56   :  { %387 = vperm.xlu1 %1090, %v1124_v1   ;;  %383 = vperm.xlu0 %1098, %v14_v4  }
  0x5a   :  { %1091 = vset.pattern.permute.xlu1 %v1103_v13  ;;  %407 = vperm.xlu0 %1098, %v1154_v7  }
  0x5b   :  { %215 = vperm.xlu1 %1091, %v1154_v7  }
  0x5e   :  { %415 = vperm.xlu0 %1098, %v1166_v9  }
  0x5f   :  { %1092 = vset.pattern.permute.xlu1 %v1104_v14 }
  0x60   :  { %303 = vperm.xlu1 %1092, %v1142_v5  }
  0x64   :  { %307 = vperm.xlu1 %1092, %v1159_v8  }
  0x68   :  { %1093 = vset.pattern.permute.xlu1 %v1105_v15 }
  0x69   :  { %391 = vperm.xlu1 %1093, %v1133_v3  }
  0x6d   :  { %395 = vperm.xlu1 %1093, %v1147_v6  }
  0x71   :  { %1095 = vset.pattern.permute.xlu1 %v1103_v13 }
  0x72   :  { %223 = vperm.xlu1 %1095, %v1166_v9  }
  0x76   :  { %1096 = vset.pattern.permute.xlu1 %v1104_v14 }
  0x77   :  { %311 = vperm.xlu1 %1096, %v1154_v7  }
  0x7b   :  { %1097 = vset.pattern.permute.xlu1 %v1105_v15 }
  0x7c   :  { %399 = vperm.xlu1 %1097, %v1142_v5  }
  0x80   :  { %403 = vperm.xlu1 %1097, %v1159_v8  }
  0x81   :  { %v48_v16 = vpop.permute.xlu1 %47  ;;  %v38_v17 = vpop.permute.xlu0 %37 }
  0x82   :  { %v98_v36 = vmul.f32 %v1240_v30, %v38_v17  ;;  %v99_v37 = vmul.f32 %v1243_v31, %v38_v17  ;;  %v685_v38 = vmul.f32 %v1246_v32, %v38_v17  ;;  %v686_v39 = vmul.f32 %v1249_v33, %v38_v17 }
  0x83   :  { %v102_v48 = vmul.f32 %v1240_v30, %v48_v16  ;;  %v103_v49 = vmul.f32 %v1243_v31, %v48_v16  ;;  %v689_v50 = vmul.f32 %v1246_v32, %v48_v16  ;;  %v690_v51 = vmul.f32 %v1249_v33, %v48_v16 }
  0x84   :  { %1099 = vset.pattern.permute.xlu1 %v1104_v14 }
  0x85   :  { %v53_v19 = vpop.permute.xlu1 %52  ;;  %319 = vperm.xlu1 %1099, %v1166_v9   ;;  %v1215_v20 = vpop.permute.xlu0 %42 }
  0x86   :  { %v687_v46 = vmul.f32 %v1246_v32, %v1215_v20  ;;  %v688_v47 = vmul.f32 %v1249_v33, %v1215_v20  ;;  %v104_v62 = vmul.f32 %v1240_v30, %v53_v19  ;;  %v105_v63 = vmul.f32 %v1243_v31, %v53_v19 }
  0x87   :  { %v691_v0 = vmul.f32 %v1246_v32, %v53_v19  ;;  %v692_v1 = vmul.f32 %v1249_v33, %v53_v19 }
  0x89   :  { %v63_v22 = vpop.permute.xlu1 %62  ;;  %1100 = vset.pattern.permute.xlu1 %v1105_v15  ;;  %v1219_v23 = vpop.permute.xlu0 %57 }
  0x8a   :  { %411 = vperm.xlu1 %1100, %v1171_v10   ;;  %v693_v58 = vmul.f32 %v1246_v32, %v1219_v23  ;;  %v694_v59 = vmul.f32 %v1249_v33, %v1219_v23  ;;  %v108_v12 = vmul.f32 %v1240_v30, %v63_v22  ;;  %v109_v13 = vmul.f32 %v1243_v31, %v63_v22 }
  0x8b   :  { %v695_v14 = vmul.f32 %v1246_v32, %v63_v22  ;;  %v696_v15 = vmul.f32 %v1249_v33, %v63_v22 }
  0x8d   :  { %v1224_v26 = vpop.permute.xlu1 %72  ;;  %v1226_v27 = vpop.permute.xlu0 %67 }
  0x8e   :  { %419 = vperm.xlu1 %1100, %v1178_v11   ;;  %v697_v8 = vmul.f32 %v1246_v32, %v1226_v27  ;;  %v698_v9 = vmul.f32 %v1249_v33, %v1226_v27 }
  0x91   :  { %v1251_v34 = vpop.permute.xlu1 %82  ;;  %v1253_v35 = vpop.permute.xlu0 %77 }
  0x95   :  { %v1259_v40 = vpop.permute.xlu0 %87 }
  0x96   :  { %v122_v41 = vpop.permute.xlu1 %121 }
  0x97   :  { %v1261_v42 = vadd.f32 %v122_v41, %v98_v36  ;;  %v1263_v43 = vadd.f32 %v122_v41, %v99_v37  ;;  %v1265_v44 = vadd.f32 %v685_v38, %v122_v41  ;;  %v1267_v45 = vadd.f32 %v686_v39, %v122_v41 }
  0x98   :  { %v701_v36 = vmul.f32 %v1246_v32, %v1253_v35  ;;  %v702_v37 = vmul.f32 %v1249_v33, %v1253_v35  ;;  %v112_v39 = vmul.f32 %v1240_v30, %v1224_v26  ;;  %v113_v41 = vmul.f32 %v1243_v31, %v1224_v26 }
  0x9a   :  { %v130_v52 = vpop.permute.xlu1 %129  ;;  %v1277_v53 = vpop.permute.xlu0 %125 }
  0x9b   :  { %v1279_v54 = vadd.f32 %v130_v52, %v102_v48  ;;  %v1281_v55 = vadd.f32 %v130_v52, %v103_v49  ;;  %v1283_v56 = vadd.f32 %v689_v50, %v130_v52  ;;  %v1285_v57 = vadd.f32 %v690_v51, %v130_v52 }
  0x9c   :  { %v1292_v60 = vadd.f32 %v687_v46, %v1277_v53  ;;  %v1295_v61 = vadd.f32 %v688_v47, %v1277_v53  ;;  %v699_v46 = vmul.f32 %v1246_v32, %v1224_v26  ;;  %v700_v47 = vmul.f32 %v1249_v33, %v1224_v26 }
  0x9d   :  { %v232_v50 = vsub.s32 1, %v1217_v21  ;;  %v731_v51 = vsub.s32 5, %v1217_v21  ;;  %v706_v26 = vmul.f32 %v1249_v33, %v1259_v40 }
  0x9e   :  { %v134_v2 = vpop.permute.xlu1 %133  ;;  %v1301_v3 = vpop.permute.xlu0 %137 }
  0x9f   :  { %v1303_v4 = vadd.f32 %v134_v2, %v104_v62  ;;  %v1305_v5 = vadd.f32 %v134_v2, %v105_v63  ;;  %v1307_v6 = vadd.f32 %v691_v0, %v134_v2  ;;  %v1309_v7 = vadd.f32 %v692_v1, %v134_v2 }
  0xa0   :  { %v1316_v10 = vadd.f32 %v693_v58, %v1301_v3  ;;  %v1319_v11 = vadd.f32 %v694_v59, %v1301_v3  ;;  %v705_v63 = vmul.f32 %v1246_v32, %v1259_v40  ;;  %v116_v2 = vmul.f32 %v1240_v30, %v1251_v34 }
  0xa2   :  { %v142_v16 = vpop.permute.xlu1 %141  ;;  %v1325_v17 = vpop.permute.xlu0 %145 }
  0xa3   :  { %v1327_v18 = vadd.f32 %v142_v16, %v108_v12  ;;  %v1329_v19 = vadd.f32 %v142_v16, %v109_v13  ;;  %v1331_v24 = vadd.f32 %v695_v14, %v142_v16  ;;  %v1333_v25 = vadd.f32 %v696_v15, %v142_v16 }
  0xa4   :  { %v1340_v38 = vadd.f32 %v697_v8, %v1325_v17  ;;  %v1343_v22 = vadd.f32 %v698_v9, %v1325_v17  ;;  %v117_v8 = vmul.f32 %v1243_v31, %v1251_v34  ;;  %v703_v9 = vmul.f32 %v1246_v32, %v1251_v34 }
  0xa5   :  { %2515 = vst [vmem:[#allocation3_spill] sm:$0xff] %v1327_v18  ;;  %2516 = vst [vmem:[#allocation4_spill] sm:$0xff] %v1329_v19  ;;  %v704_v12 = vmul.f32 %v1249_v33, %v1251_v34  ;;  %v1386_v15 = vrot.slane %v1231_v28, %v232_v50  ;;  %v1389_v16 = vrot.slane %v1236_v29, %v232_v50 }
  0xa6   :  { %v150_v48 = vpop.permute.xlu1 %149  ;;  %v1353_v49 = vpop.permute.xlu0 %153  ;;  %v1406_v34 = vrot.slane %v1231_v28, %v731_v51 }
  0xa7   :  { %v1357_v52 = vadd.f32 %v150_v48, %v112_v39  ;;  %v1359_v58 = vadd.f32 %v150_v48, %v113_v41  ;;  %v1361_v59 = vadd.f32 %v699_v46, %v150_v48  ;;  %v1363_v62 = vadd.f32 %v700_v47, %v150_v48 }
  0xa8   :  { %v1370_v0 = vadd.f32 %v701_v36, %v1353_v49  ;;  %v1373_v1 = vadd.f32 %v702_v37, %v1353_v49  ;;  %v1409_v46 = vrot.slane %v1236_v29, %v731_v51  ;;  %v328_v47 = vsub.s32 2, %v1217_v21 }
  0xa9   :  { %2517 = vst [vmem:[#allocation5_spill] sm:$0xff] %v1357_v52  ;;  %2518 = vst [vmem:[#allocation6_spill] sm:$0xff] %v1359_v58  ;;  %v783_v48 = vsub.s32 6, %v1217_v21 }
  0xaa   :  { %2519 = vst [vmem:[#allocation7_spill] sm:$0xff] %v1361_v59  ;;  %2520 = vst [vmem:[#allocation8_spill] sm:$0xff] %v1363_v62  ;;  %v158_v13 = vpop.permute.xlu1 %157  ;;  %v1383_v14 = vpop.permute.xlu0 %161  ;;  %v1423_v51 = vrot.slane %v1236_v29, %v328_v47  ;;  %v118_v62 = vmul.f32 %v1240_v30, %v1259_v40 }
  0xab   :  { %2521 = vst [vmem:[#allocation9_spill] sm:$0xff] %v1370_v0  ;;  %2522 = vst [vmem:[#allocation10_spill] sm:$0xff] %v1373_v1  ;;  %v1391_v36 = vadd.f32 %v158_v13, %v116_v2  ;;  %v1393_v37 = vadd.f32 %v158_v13, %v117_v8  ;;  %v1395_v39 = vadd.f32 %v703_v9, %v158_v13 }
  0xac   :  { %v1397_v41 = vadd.f32 %v704_v12, %v158_v13  ;;  %v1400_v32 = vadd.f32 %v705_v63, %v1383_v14  ;;  %v1403_v33 = vadd.f32 %v706_v26, %v1383_v14  ;;  %2529 = vst [vmem:[#allocation17_spill] sm:$0xff] %v1409_v46  ;;  %v1420_v12 = vrot.slane %v1231_v28, %v328_v47 }
  0xad   :  { %2523 = vst [vmem:[#allocation11_spill] sm:$0xff] %v1391_v36  ;;  %2524 = vst [vmem:[#allocation12_spill] sm:$0xff] %v1393_v37  ;;  %v1426_v13 = vrot.slane %v1231_v28, %v783_v48 }
  0xae   :  { %2525 = vst [vmem:[#allocation13_spill] sm:$0xff] %v1395_v39  ;;  %2526 = vst [vmem:[#allocation14_spill] sm:$0xff] %v1397_v41  ;;  %v1429_v41 = vrot.slane %v1236_v29, %v783_v48 }
  0xaf   :  { %2527 = vst [vmem:[#allocation15_spill] sm:$0xff] %v1400_v32  ;;  %2528 = vst [vmem:[#allocation16_spill] sm:$0xff] %v1403_v33  ;;  %v188_v50 = vpop.permute.xlu1 %187  ;;  %v1413_v2 = vpop.permute.xlu0 %195  ;;  %v424_v32 = vsub.s32 3, %v1217_v21 }
  0xb0   :  { %v238_v8 = vmul.f32 %v1386_v15, %v188_v50  ;;  %v239_v63 = vmul.f32 %v1389_v16, %v188_v50  ;;  %v737_v26 = vmul.f32 %v1406_v34, %v188_v50  ;;  %v738_v9 = vmul.f32 %v1409_v46, %v188_v50 }
  0xb2   :  { %v260_v39 = vadd.f32 %v238_v8, %v1261_v42  ;;  %v261_v37 = vadd.f32 %v239_v63, %v1263_v43  ;;  %v759_v36 = vadd.f32 %v737_v26, %v1265_v44  ;;  %v760_v50 = vadd.f32 %v738_v9, %v1267_v45 }
  0xb3   :  { %v1435_v58 = vpop.permute.xlu0 %199  ;;  %v835_v9 = vsub.s32 7, %v1217_v21 }
  0xb4   :  { %v284_v52 = vpop.permute.xlu1 %283 }
  0xb5   :  { %v334_v47 = vmul.f32 %v1420_v12, %v284_v52  ;;  %v335_v19 = vmul.f32 %v1423_v51, %v284_v52  ;;  %v789_v18 = vmul.f32 %v1426_v13, %v284_v52  ;;  %v790_v48 = vmul.f32 %v1429_v41, %v284_v52 }
  0xb7   :  { %v1441_v33 = vadd.f32 %v334_v47, %v260_v39  ;;  %v1443_v42 = vadd.f32 %v335_v19, %v261_v37  ;;  %v811_v43 = vadd.f32 %v789_v18, %v759_v36  ;;  %v812_v8 = vadd.f32 %v790_v48, %v760_v50  ;;  %v1445_v44 = vpop.permute.xlu0 %211 }
  0xb8   :  { %v1469_v50 = vrot.slane %v1231_v28, %v835_v9  ;;  %v1472_v47 = vrot.slane %v1236_v29, %v835_v9 }
  0xb9   :  { %v1447_v45 = vpop.permute.xlu1 %191 }
  0xba   :  { %v739_v63 = vmul.f32 %v1406_v34, %v1447_v45  ;;  %v740_v26 = vmul.f32 %v1409_v46, %v1447_v45 }
  0xbb   :  { %v1462_v36 = vpop.permute.xlu0 %219 }
  0xbc   :  { %v1455_v52 = vadd.f32 %v739_v63, %v1292_v60  ;;  %v1458_v19 = vadd.f32 %v740_v26, %v1295_v61 }
  0xbd   :  { %v1460_v18 = vpop.permute.xlu1 %203 }
  0xbe   :  { %v745_v37 = vmul.f32 %v1406_v34, %v1460_v18  ;;  %v746_v39 = vmul.f32 %v1409_v46, %v1460_v18 }
  0xbf   :  { %v1487_v1 = vpop.permute.xlu0 %227 }
  0xc0   :  { %v1475_v60 = vadd.f32 %v745_v37, %v1316_v10  ;;  %v1478_v61 = vadd.f32 %v746_v39, %v1319_v11  ;;  %v100_v10 = vmul.f32 %v1240_v30, %v1215_v20  ;;  %v101_v11 = vmul.f32 %v1243_v31, %v1215_v20 }
  0xc1   :  { %v106_v37 = vmul.f32 %v1240_v30, %v1219_v23  ;;  %v107_v39 = vmul.f32 %v1243_v31, %v1219_v23  ;;  %v111_v20 = vmul.f32 %v1243_v31, %v1226_v27  ;;  %v115_v23 = vmul.f32 %v1243_v31, %v1253_v35 }
  0xc2   :  { %2530 = vst [vmem:[#allocation18_spill] sm:$0xff] %v1475_v60  ;;  %2531 = vst [vmem:[#allocation19_spill] sm:$0xff] %v1478_v61  ;;  %v1480_v48 = vpop.permute.xlu1 %379  ;;  %v110_v61 = vmul.f32 %v1240_v30, %v1226_v27  ;;  %v1528_v27 = vadd.f32 %v1277_v53, %v101_v11  ;;  %v742_v11 = vmul.f32 %v1409_v46, %v1413_v2 }
  0xc3   :  { %v841_v63 = vmul.f32 %v1469_v50, %v1480_v48  ;;  %v842_v26 = vmul.f32 %v1472_v47, %v1480_v48 }
  0xc5   :  { %v1489_v9 = vadd.f32 %v841_v63, %v811_v43  ;;  %v1491_v0 = vadd.f32 %v842_v26, %v812_v8  ;;  %v1506_v43 = vrot.slane %v1231_v28, %v424_v32  ;;  %v1509_v8 = vrot.slane %v1236_v29, %v424_v32 }
  0xc6   :  { %v114_v63 = vmul.f32 %v1240_v30, %v1253_v35  ;;  %v1518_v26 = vadd.s32 8, %v1217_v21  ;;  %v119_v28 = vmul.f32 %v1243_v31, %v1259_v40  ;;  %v1525_v29 = vadd.f32 %v1277_v53, %v100_v10  ;;  %v292_v21 = vpop.permute.xlu0 %291 }
  0xc7   :  { %2532 = vst [vmem:[#allocation20_spill] sm:$0xff] %v1489_v9  ;;  %2533 = vst [vmem:[#allocation21_spill] sm:$0xff] %v1491_v0  ;;  %v1503_v60 = vpop.permute.xlu1 %207  ;;  %v1531_v32 = vadd.f32 %v1301_v3, %v106_v37  ;;  %v1534_v35 = vadd.f32 %v1301_v3, %v107_v39  ;;  %v242_v30 = vmul.f32 %v1386_v15, %v1413_v2 }
  0xc8   :  { %2534 = vst [vmem:[#allocation22_spill] sm:$0xff] %v1503_v60  ;;  %2535 = vst [vmem:[#allocation23_spill] sm:$0xff] %v1518_v26  ;;  %v176_v26 = vadd.f32 %v1325_v17, %v110_v61  ;;  %v243_v31 = vmul.f32 %v1389_v16, %v1413_v2  ;;  %v741_v40 = vmul.f32 %v1406_v34, %v1413_v2 }
  0xc9   :  { %2536 = vst [vmem:[#allocation24_spill] sm:$0xff] %v1531_v32  ;;  %2537 = vst [vmem:[#allocation25_spill] sm:$0xff] %v1534_v35  ;;  %v747_v53 = vmul.f32 %v1406_v34, %v1503_v60  ;;  %v748_v10 = vmul.f32 %v1409_v46, %v1503_v60  ;;  %v177_v61 = vadd.f32 %v1325_v17, %v111_v20 }
  0xca   :  { %v244_v37 = vmul.f32 %v1386_v15, %v1435_v58  ;;  %v743_v39 = vmul.f32 %v1406_v34, %v1435_v58  ;;  %v1557_v35 = vadd.f32 %v1353_v49, %v114_v63  ;;  %v1560_v32 = vadd.f32 %v1353_v49, %v115_v23 }
  0xcb   :  { %v1563_v60 = vadd.f32 %v747_v53, %v1331_v24  ;;  %v1566_v17 = vadd.f32 %v748_v10, %v1333_v25  ;;  %v1569_v2 = vadd.f32 %v1383_v14, %v118_v62  ;;  %v1572_v20 = vadd.f32 %v1383_v14, %v119_v28 }
  0xcc   :  { %v1547_v3 = vpop.permute.xlu1 %287  ;;  %v264_v59 = vadd.f32 %v242_v30, %v1279_v54  ;;  %v744_v63 = vmul.f32 %v1409_v46, %v1435_v58  ;;  %v265_v49 = vadd.f32 %v243_v31, %v1281_v55  ;;  %v763_v23 = vadd.f32 %v741_v40, %v1283_v56  ;;  %v1592_v56 = vpop.permute.xlu0 %299 }
  0xcd   :  { %2538 = vst [vmem:[#allocation26_spill] sm:$0xff] %v1563_v60  ;;  %v791_v24 = vmul.f32 %v1426_v13, %v1547_v3  ;;  %v792_v25 = vmul.f32 %v1429_v41, %v1547_v3  ;;  %v764_v14 = vadd.f32 %v742_v11, %v1285_v57  ;;  %v245_v54 = vmul.f32 %v1389_v16, %v1435_v58 }
  0xce   :  { %v1589_v28 = vadd.f32 %v244_v37, %v1303_v4  ;;  %v765_v55 = vadd.f32 %v743_v39, %v1307_v6  ;;  %v250_v30 = vmul.f32 %v1386_v15, %v1445_v44  ;;  %v251_v31 = vmul.f32 %v1389_v16, %v1445_v44 }
  0xcf   :  { %v1599_v40 = vadd.f32 %v791_v24, %v1455_v52  ;;  %v1602_v57 = vadd.f32 %v792_v25, %v1458_v19  ;;  %v766_v58 = vadd.f32 %v744_v63, %v1309_v7  ;;  %v749_v4 = vmul.f32 %v1406_v34, %v1445_v44 }
  0xd0   :  { %v1583_v62 = vpop.permute.xlu1 %295  ;;  %v430_v6 = vmul.f32 %v1506_v43, %v1480_v48  ;;  %v431_v53 = vmul.f32 %v1509_v8, %v1480_v48  ;;  %v338_v10 = vmul.f32 %v1420_v12, %v292_v21  ;;  %v339_v11 = vmul.f32 %v1423_v51, %v292_v21 }
  0xd1   :  { %2539 = vst [vmem:[#allocation27_spill] sm:$0xff] %v1599_v40  ;;  %2540 = vst [vmem:[#allocation28_spill] sm:$0xff] %v1602_v57  ;;  %v795_v52 = vmul.f32 %v1426_v13, %v1583_v62  ;;  %v796_v19 = vmul.f32 %v1429_v41, %v1583_v62  ;;  %v1618_v7 = vadd.f32 %v245_v54, %v1305_v5 }
  0xd2   :  { %v750_v37 = vmul.f32 %v1409_v46, %v1445_v44  ;;  %v793_v39 = vmul.f32 %v1426_v13, %v292_v21  ;;  %v794_v48 = vmul.f32 %v1429_v41, %v292_v21  ;;  %v1624_v24 = vadd.f32 %v250_v30, %v176_v26  ;;  %v1643_v26 = vpop.permute.xlu0 %315 }
  0xd3   :  { %v1626_v25 = vadd.f32 %v251_v31, %v177_v61  ;;  %v1628_v60 = vadd.f32 %v795_v52, %v765_v55  ;;  %v1630_v57 = vadd.f32 %v796_v19, %v766_v58  ;;  %v1633_v40 = vadd.f32 %v749_v4, %v1340_v38 }
  0xd4   :  { %v240_v5 = vmul.f32 %v1386_v15, %v1447_v45  ;;  %v1638_v44 = vadd.f32 %v430_v6, %v1441_v33  ;;  %v1641_v21 = vadd.f32 %v431_v53, %v1443_v42  ;;  %v360_v61 = vadd.f32 %v338_v10, %v264_v59 }
  0xd5   :  { %v388_v63 = vpop.permute.xlu1 %387  ;;  %v361_v54 = vadd.f32 %v339_v11, %v265_v49  ;;  %v815_v31 = vadd.f32 %v793_v39, %v763_v23  ;;  %v816_v38 = vadd.f32 %v794_v48, %v764_v14  ;;  %v241_v33 = vmul.f32 %v1389_v16, %v1447_v45 }
  0xd6   :  { %2541 = vst [vmem:[#allocation29_spill] sm:$0xff] %v1638_v44  ;;  %2542 = vst [vmem:[#allocation30_spill] sm:$0xff] %v1641_v21  ;;  %v434_v55 = vmul.f32 %v1506_v43, %v388_v63  ;;  %v435_v30 = vmul.f32 %v1509_v8, %v388_v63  ;;  %v845_v58 = vmul.f32 %v1469_v50, %v388_v63  ;;  %v1661_v23 = vsel %vm2513_vm0, %v1638_v44, -inf }
  0xd7   :  { %v846_v4 = vmul.f32 %v1472_v47, %v388_v63  ;;  %v254_v42 = vmul.f32 %v1386_v15, %v1462_v36  ;;  %v1665_v14 = vsel %vm2513_vm0, %v1641_v21, -inf  ;;  %v1677_v52 = vsel %vm2513_vm0, %v1489_v9, -inf  ;;  %v1687_v63 = vpop.permute.xlu0 %323 }
  0xd8   :  { %v1653_v6 = vadd.f32 %v434_v55, %v360_v61  ;;  %v1655_v59 = vadd.f32 %v435_v30, %v361_v54  ;;  %v1667_v53 = vadd.f32 %v845_v58, %v815_v31  ;;  %v1681_v19 = vsel %vm2513_vm0, %v1491_v0, -inf  ;;  %v2547_v0 = vld [vmem:[#allocation7_spill] sm:$0xff] }
  0xd9   :  { %v1669_v45 = vadd.f32 %v846_v4, %v816_v38  ;;  %v255_v39 = vmul.f32 %v1389_v16, %v1462_v36  ;;  %v753_v48 = vmul.f32 %v1406_v34, %v1462_v36  ;;  %v754_v55 = vmul.f32 %v1409_v46, %v1462_v36 }
  0xda   :  { %2543 = vst [vmem:[#allocation31_spill] sm:$0xff] %v1653_v6  ;;  %2544 = vst [vmem:[#allocation32_spill] sm:$0xff] %v1655_v59  ;;  %v1657_v49 = vpop.permute.xlu1 %215  ;;  %v246_v30 = vmul.f32 %v1386_v15, %v1460_v18  ;;  %v1702_v58 = vadd.f32 %v750_v37, %v1343_v22  ;;  %v247_v4 = vmul.f32 %v1389_v16, %v1460_v18  ;;  %v2548_v22 = vld [vmem:[#allocation8_spill] sm:$0xff] }
  0xdb   :  { %2545 = vst [vmem:[#allocation33_spill] sm:$0xff] %v1667_v53  ;;  %2546 = vst [vmem:[#allocation34_spill] sm:$0xff] %v1669_v45  ;;  %v751_v31 = vmul.f32 %v1406_v34, %v1657_v49  ;;  %v752_v38 = vmul.f32 %v1409_v46, %v1657_v49  ;;  %v258_v54 = vmul.f32 %v1386_v15, %v1487_v1 }
  0xdc   :  { %v259_v36 = vmul.f32 %v1389_v16, %v1487_v1  ;;  %v262_v11 = vadd.f32 %v240_v5, %v1525_v29  ;;  %v263_v10 = vadd.f32 %v241_v33, %v1528_v27  ;;  %v1721_v18 = vadd.f32 %v254_v42, %v1557_v35  ;;  %v2553_v33 = vld [vmem:[#allocation10_spill] sm:$0xff]  ;;  %v2555_v35 = vld [vmem:[#allocation24_spill] sm:$0xff] }
  0xdd   :  { %v1715_v9 = vadd.f32 %v751_v31, %v2547_v0  ;;  %v1718_v37 = vadd.f32 %v752_v38, %v2548_v22  ;;  %v757_v21 = vmul.f32 %v1406_v34, %v1487_v1  ;;  %v758_v44 = vmul.f32 %v1409_v46, %v1487_v1  ;;  %v2551_v0 = vld [vmem:[#allocation9_spill] sm:$0xff]  ;;  %v384_v46 = vpop.permute.xlu0 %383 }
  0xde   :  { %2549 = vst [vmem:[#allocation7_spill] sm:$0xff] %v1721_v18  ;;  %v1730_v27 = vadd.f32 %v255_v39, %v1560_v32  ;;  %v1733_v5 = vadd.f32 %v753_v48, %v2551_v0  ;;  %v1736_v31 = vadd.f32 %v754_v55, %v2553_v33  ;;  %v268_v42 = vadd.f32 %v246_v30, %v2555_v35  ;;  %v2556_v38 = vld [vmem:[#allocation25_spill] sm:$0xff] }
  0xdf   :  { %v1710_v61 = vpop.permute.xlu1 %303  ;;  %v269_v22 = vadd.f32 %v247_v4, %v2556_v38  ;;  %v1741_v18 = vadd.f32 %v258_v54, %v1569_v2  ;;  %v1744_v1 = vadd.f32 %v259_v36, %v1572_v20  ;;  %v336_v48 = vmul.f32 %v1420_v12, %v1547_v3  ;;  %v2560_v20 = vld [vmem:[#allocation15_spill] sm:$0xff]  ;;  %v2562_v4 = vld [vmem:[#allocation16_spill] sm:$0xff]  ;;  %v2564_v36 = vld [vmem:[#allocation22_spill] sm:$0xff] }
  0xe0   :  { %v800_v29 = vmul.f32 %v1429_v41, %v1710_v61  ;;  %2550 = vst [vmem:[#allocation8_spill] sm:$0xff] %v1730_v27  ;;  %2552 = vst [vmem:[#allocation9_spill] sm:$0xff] %v1733_v5  ;;  %v337_v55 = vmul.f32 %v1423_v51, %v1547_v3  ;;  %v340_v30 = vmul.f32 %v1420_v12, %v1583_v62 }
  0xe1   :  { %2554 = vst [vmem:[#allocation10_spill] sm:$0xff] %v1736_v31  ;;  %2557 = vst [vmem:[#allocation24_spill] sm:$0xff] %v1741_v18  ;;  %v341_v2 = vmul.f32 %v1423_v51, %v1583_v62  ;;  %v1760_v54 = vadd.f32 %v757_v21, %v2560_v20  ;;  %v249_v0 = vmul.f32 %v1389_v16, %v2564_v36 }
  0xe2   :  { %2558 = vst [vmem:[#allocation25_spill] sm:$0xff] %v1744_v1  ;;  %v1747_v32 = vadd.f32 %v800_v29, %v1566_v17  ;;  %v1763_v17 = vadd.f32 %v758_v44, %v2562_v4  ;;  %v248_v29 = vmul.f32 %v1386_v15, %v2564_v36  ;;  %v432_v3 = vmul.f32 %v1506_v43, %v384_v46 }
  0xe3   :  { %v1749_v39 = vpop.permute.xlu1 %307  ;;  %2561 = vst [vmem:[#allocation15_spill] sm:$0xff] %v1760_v54  ;;  %v433_v33 = vmul.f32 %v1509_v8, %v384_v46  ;;  %v843_v35 = vmul.f32 %v1469_v50, %v384_v46  ;;  %v844_v62 = vmul.f32 %v1472_v47, %v384_v46  ;;  %v342_v21 = vmul.f32 %v1420_v12, %v1592_v56 }
  0xe4   :  { %2559 = vst [vmem:[#allocation35_spill] sm:$0xff] %v1747_v32  ;;  %2563 = vst [vmem:[#allocation16_spill] sm:$0xff] %v1763_v17  ;;  %v343_v44 = vmul.f32 %v1423_v51, %v1592_v56  ;;  %v797_v38 = vmul.f32 %v1426_v13, %v1592_v56  ;;  %v798_v20 = vmul.f32 %v1429_v41, %v1592_v56  ;;  %v2565_v56 = vld [vmem:[#allocation27_spill] sm:$0xff] }
  0xe5   :  { %v358_v4 = vadd.f32 %v336_v48, %v262_v11  ;;  %v359_v36 = vadd.f32 %v337_v55, %v263_v10  ;;  %v362_v17 = vadd.f32 %v340_v30, %v1589_v28  ;;  %v363_v54 = vadd.f32 %v341_v2, %v1618_v7  ;;  %v2566_v10 = vld [vmem:[#allocation28_spill] sm:$0xff] }
  0xe6   :  { %v1792_v11 = vadd.f32 %v843_v35, %v2565_v56  ;;  %v1795_v28 = vadd.f32 %v844_v62, %v2566_v10  ;;  %v365_v2 = vadd.f32 %v343_v44, %v269_v22  ;;  %v346_v62 = vmul.f32 %v1420_v12, %v1749_v39 }
  0xe7   :  { %v1787_v27 = vadd.f32 %v432_v3, %v358_v4  ;;  %v1789_v32 = vadd.f32 %v433_v33, %v359_v36  ;;  %v2567_v3 = vld [vmem:[#allocation18_spill] sm:$0xff]  ;;  %v2568_v4 = vld [vmem:[#allocation19_spill] sm:$0xff] }
  0xe8   :  { %v392_v1 = vpop.permute.xlu1 %391  ;;  %v819_v33 = vadd.f32 %v797_v38, %v2567_v3  ;;  %v820_v35 = vadd.f32 %v798_v20, %v2568_v4  ;;  %v1825_v38 = vmul.f32 %v1420_v12, %v1643_v26  ;;  %v1829_v20 = vmul.f32 %v1423_v51, %v1643_v26 }
  0xe9   :  { %v436_v46 = vmul.f32 %v1506_v43, %v392_v1  ;;  %v437_v18 = vmul.f32 %v1509_v8, %v392_v1  ;;  %v847_v31 = vmul.f32 %v1469_v50, %v392_v1  ;;  %v848_v5 = vmul.f32 %v1472_v47, %v392_v1 }
  0xea   :  { %v364_v1 = vadd.f32 %v342_v21, %v268_v42  ;;  %v2570_v21 = vld [vmem:[#allocation4_spill] sm:$0xff]  ;;  %2571 = vst [vmem:[#allocation22_spill] sm:$0xff] %v1829_v20  ;;  %v1849_v4 = vmul.f32 %v1420_v12, %v1687_v63 }
  0xeb   :  { %v1797_v7 = vadd.f32 %v436_v46, %v362_v17  ;;  %v1799_v48 = vadd.f32 %v437_v18, %v363_v54  ;;  %v1802_v55 = vadd.f32 %v847_v31, %v1628_v60  ;;  %v1805_v30 = vadd.f32 %v848_v5, %v1630_v57  ;;  %v2569_v54 = vld [vmem:[#allocation3_spill] sm:$0xff] }
  0xec   :  { %v396_v36 = vpop.permute.xlu1 %395  ;;  %v270_v17 = vadd.f32 %v248_v29, %v2569_v54  ;;  %v271_v44 = vadd.f32 %v249_v0, %v2570_v21  ;;  %v1841_v29 = vmul.f32 %v1426_v13, %v1643_v26  ;;  %v1845_v0 = vmul.f32 %v1429_v41, %v1643_v26  ;;  %2578 = vst [vmem:[#allocation36_spill] sm:$0xff] %v1849_v4 }
  0xed   :  { %v438_v5 = vmul.f32 %v1506_v43, %v396_v36  ;;  %v439_v31 = vmul.f32 %v1509_v8, %v396_v36  ;;  %v849_v42 = vmul.f32 %v1469_v50, %v396_v36  ;;  %v850_v22 = vmul.f32 %v1472_v47, %v396_v36 }
  0xee   :  { %2576 = vst [vmem:[#allocation3_spill] sm:$0xff] %v1841_v29  ;;  %2577 = vst [vmem:[#allocation4_spill] sm:$0xff] %v1845_v0  ;;  %v2580_v26 = vmax.f32 %v1665_v14, %v1655_v59  ;;  %v1883_v14 = vmul.f32 %v1426_v13, %v1687_v63  ;;  %v1887_v21 = vmul.f32 %v1429_v41, %v1687_v63 }
  0xef   :  { %v1831_v46 = vadd.f32 %v438_v5, %v364_v1  ;;  %v1833_v56 = vadd.f32 %v439_v31, %v365_v2  ;;  %v1835_v10 = vadd.f32 %v849_v42, %v819_v33  ;;  %v1837_v3 = vadd.f32 %v850_v22, %v820_v35  ;;  %v408_v33 = vpop.permute.xlu0 %407 }
  0xf0   :  { %v252_v1 = vmul.f32 %v1386_v15, %v1657_v49  ;;  %v2579_v35 = vmax.f32 %v1661_v23, %v1653_v6  ;;  %v2581_v31 = vmax.f32 %v1677_v52, %v1667_v53  ;;  %v2582_v22 = vmax.f32 %v1681_v19, %v1669_v45  ;;  %2584 = vst [vmem:[#allocation38_spill] sm:$0xff] %v1883_v14 }
  0xf1   :  { %2572 = vst [vmem:[#allocation27_spill] sm:$0xff] %v1831_v46  ;;  %2573 = vst [vmem:[#allocation28_spill] sm:$0xff] %v1833_v56  ;;  %v224_v2 = vpop.permute.xlu1 %223  ;;  %v1863_v5 = vmax.f32 %v2580_v26, %v1833_v56  ;;  %v1879_v23 = vmul.f32 %v1423_v51, %v1687_v63  ;;  %v253_v52 = vmul.f32 %v1389_v16, %v1657_v49  ;;  %v2587_v56 = vld [vmem:[#allocation6_spill] sm:$0xff] }
  0xf2   :  { %2574 = vst [vmem:[#allocation18_spill] sm:$0xff] %v1835_v10  ;;  %2575 = vst [vmem:[#allocation19_spill] sm:$0xff] %v1837_v3  ;;  %v1857_v36 = vmax.f32 %v2579_v35, %v1831_v46  ;;  %v1869_v42 = vmax.f32 %v2581_v31, %v1835_v10  ;;  %v1875_v54 = vmax.f32 %v2582_v22, %v1837_v3  ;;  %v2586_v22 = vld [vmem:[#allocation5_spill] sm:$0xff] }
  0xf3   :  { %2583 = vst [vmem:[#allocation37_spill] sm:$0xff] %v1879_v23  ;;  %2585 = vst [vmem:[#allocation39_spill] sm:$0xff] %v1887_v21  ;;  %v444_v35 = vmul.f32 %v1506_v43, %v408_v33  ;;  %v445_v19 = vmul.f32 %v1509_v8, %v408_v33  ;;  %v855_v26 = vmul.f32 %v1469_v50, %v408_v33  ;;  %v416_v49 = vpop.permute.xlu0 %415  ;;  %v2590_v23 = vld [vmem:[#allocation26_spill] sm:$0xff] }
  0xf4   :  { %v856_v31 = vmul.f32 %v1472_v47, %v408_v33  ;;  %v274_v57 = vadd.f32 %v252_v1, %v2586_v22  ;;  %v344_v60 = vmul.f32 %v1420_v12, %v1710_v61  ;;  %v345_v63 = vmul.f32 %v1423_v51, %v1710_v61 }
  0xf5   :  { %v799_v18 = vmul.f32 %v1426_v13, %v1710_v61  ;;  %v347_v3 = vmul.f32 %v1423_v51, %v1749_v39  ;;  %v801_v33 = vmul.f32 %v1426_v13, %v1749_v39  ;;  %v802_v1 = vmul.f32 %v1429_v41, %v1749_v39 }
  0xf6   :  { %v312_v22 = vpop.permute.xlu1 %311  ;;  %v275_v46 = vadd.f32 %v253_v52, %v2587_v56  ;;  %v1916_v59 = vmul.f32 %v1506_v43, %v416_v49  ;;  %v1919_v6 = vmul.f32 %v1509_v8, %v416_v49  ;;  %v1922_v21 = vmul.f32 %v1469_v50, %v416_v49 }
  0xf7   :  { %v348_v10 = vmul.f32 %v1420_v12, %v312_v22  ;;  %v349_v45 = vmul.f32 %v1423_v51, %v312_v22  ;;  %v803_v61 = vmul.f32 %v1426_v13, %v312_v22  ;;  %v804_v53 = vmul.f32 %v1429_v41, %v312_v22 }
  0xf8   :  { %2588 = vst [vmem:[#allocation5_spill] sm:$0xff] %v1916_v59  ;;  %2589 = vst [vmem:[#allocation6_spill] sm:$0xff] %v1919_v6  ;;  %v366_v39 = vadd.f32 %v344_v60, %v270_v17  ;;  %v367_v14 = vadd.f32 %v345_v63, %v271_v44  ;;  %v821_v4 = vadd.f32 %v799_v18, %v2590_v23 }
  0xf9   :  { %v1926_v0 = vmul.f32 %v1472_v47, %v416_v49  ;;  %v368_v22 = vadd.f32 %v346_v62, %v1624_v24  ;;  %v369_v56 = vadd.f32 %v347_v3, %v1626_v25  ;;  %v823_v52 = vadd.f32 %v801_v33, %v1633_v40 }
  0xfa   :  { %v824_v59 = vadd.f32 %v802_v1, %v1702_v58  ;;  %v370_v29 = vadd.f32 %v348_v10, %v274_v57  ;;  %v371_v6 = vadd.f32 %v349_v45, %v275_v46  ;;  %v825_v20 = vadd.f32 %v803_v61, %v1715_v9  ;;  %v2591_v45 = vld [vmem:[#allocation17_spill] sm:$0xff]  ;;  %v2592_v57 = vld [vmem:[#allocation35_spill] sm:$0xff] }
  0xfb   :  { %v826_v60 = vadd.f32 %v804_v53, %v1718_v37  ;;  %v400_v17 = vpop.permute.xlu1 %399  ;;  %v256_v25 = vmul.f32 %v1386_v15, %v224_v2  ;;  %v257_v40 = vmul.f32 %v1389_v16, %v224_v2  ;;  %v755_v58 = vmul.f32 %v1406_v34, %v224_v2 }
  0xfc   :  { %v440_v18 = vmul.f32 %v1506_v43, %v400_v17  ;;  %v441_v44 = vmul.f32 %v1509_v8, %v400_v17  ;;  %v851_v23 = vmul.f32 %v1469_v50, %v400_v17  ;;  %v852_v24 = vmul.f32 %v1472_v47, %v400_v17 }
  0xfd   :  { %v756_v62 = vmul.f32 %v2591_v45, %v224_v2  ;;  %v1951_v10 = vadd.f32 %v444_v35, %v370_v29  ;;  %v1953_v3 = vadd.f32 %v445_v19, %v371_v6  ;;  %v1955_v15 = vadd.f32 %v855_v26, %v825_v20  ;;  %v2600_v45 = vld [vmem:[#allocation12_spill] sm:$0xff] }
  0xfe   :  { %v1942_v9 = vadd.f32 %v440_v18, %v366_v39  ;;  %v1944_v53 = vadd.f32 %v441_v44, %v367_v14  ;;  %v1946_v37 = vadd.f32 %v851_v23, %v821_v4  ;;  %v1949_v46 = vadd.f32 %v852_v24, %v2592_v57  ;;  %v2599_v23 = vld [vmem:[#allocation11_spill] sm:$0xff] }
  0xff   :  { %2593 = vst [vmem:[#allocation26_spill] sm:$0xff] %v1955_v15  ;;  %v1957_v16 = vadd.f32 %v856_v31, %v826_v60  ;;  %v404_v34 = vpop.permute.xlu1 %403  ;;  %v2595_v2 = vmax.f32 %v1787_v27, %v1797_v7  ;;  %v2596_v4 = vmax.f32 %v1789_v32, %v1799_v48  ;;  %v2597_v6 = vmax.f32 %v1792_v11, %v1802_v55 }
 0x100   :  { %v2598_v20 = vmax.f32 %v1795_v28, %v1805_v30  ;;  %v442_v19 = vmul.f32 %v1506_v43, %v404_v34  ;;  %v443_v26 = vmul.f32 %v1509_v8, %v404_v34  ;;  %v853_v31 = vmul.f32 %v1469_v50, %v404_v34 }
 0x101   :  { %2594 = vst [vmem:[#allocation17_spill] sm:$0xff] %v1957_v16  ;;  %v498_v14 = vmax.f32 %v2595_v2, %v1942_v9  ;;  %v517_v63 = vmax.f32 %v2596_v4, %v1944_v53  ;;  %v907_v29 = vmax.f32 %v2597_v6, %v1946_v37  ;;  %v854_v49 = vmul.f32 %v1472_v47, %v404_v34  ;;  %v2601_v34 = vld [vmem:[#allocation13_spill] sm:$0xff] }
 0x102   :  { %v925_v35 = vmax.f32 %v2598_v20, %v1949_v46  ;;  %v1983_v60 = vadd.f32 %v442_v19, %v368_v22  ;;  %v1985_v17 = vadd.f32 %v443_v26, %v369_v56  ;;  %v1987_v18 = vadd.f32 %v853_v31, %v823_v52  ;;  %v2605_v20 = vld [vmem:[#allocation22_spill] sm:$0xff]  ;;  %v2607_v19 = vld [vmem:[#allocation3_spill] sm:$0xff]  ;;  %v2609_v31 = vld [vmem:[#allocation4_spill] sm:$0xff] }
 0x103   :  { %v500_v33 = vmax.f32 %v498_v14, %v1951_v10  ;;  %v519_v1 = vmax.f32 %v517_v63, %v1953_v3  ;;  %v909_v61 = vmax.f32 %v907_v29, %v1955_v15  ;;  %v1989_v44 = vadd.f32 %v854_v49, %v824_v59  ;;  %v2602_v14 = vld [vmem:[#allocation14_spill] sm:$0xff]  ;;  %v2604_v29 = vld [vmem:[#allocation8_spill] sm:$0xff]  ;;  %v2618_v15 = vld [vmem:[#allocation5_spill] sm:$0xff] }
 0x104   :  { %v927_v39 = vmax.f32 %v925_v35, %v1957_v16  ;;  %v278_v24 = vadd.f32 %v256_v25, %v2599_v23  ;;  %v279_v57 = vadd.f32 %v257_v40, %v2600_v45  ;;  %v777_v2 = vadd.f32 %v755_v58, %v2601_v34  ;;  %v320_v63 = vpop.permute.xlu1 %319  ;;  %v2606_v35 = vld [vmem:[#allocation9_spill] sm:$0xff]  ;;  %v2608_v26 = vld [vmem:[#allocation10_spill] sm:$0xff]  ;;  %v2610_v45 = vld [vmem:[#allocation24_spill] sm:$0xff] }
 0x105   :  { %v778_v4 = vadd.f32 %v756_v62, %v2602_v14  ;;  %v499_v6 = vmax.f32 %v1857_v36, %v1983_v60  ;;  %v518_v22 = vmax.f32 %v1863_v5, %v1985_v17  ;;  %v908_v56 = vmax.f32 %v1869_v42, %v1987_v18  ;;  %v2603_v62 = vld [vmem:[#allocation7_spill] sm:$0xff]  ;;  %v2612_v14 = vld [vmem:[#allocation25_spill] sm:$0xff]  ;;  %v2616_v16 = vld [vmem:[#allocation16_spill] sm:$0xff] }
 0x106   :  { %v926_v59 = vmax.f32 %v1875_v54, %v1989_v44  ;;  %v352_v52 = vmul.f32 %v1420_v12, %v320_v63  ;;  %v353_v25 = vmul.f32 %v1423_v51, %v320_v63  ;;  %v807_v40 = vmul.f32 %v1426_v13, %v320_v63 }
 0x107   :  { %v808_v58 = vmul.f32 %v1429_v41, %v320_v63  ;;  %v372_v36 = vadd.f32 %v1825_v38, %v2603_v62  ;;  %v373_v5 = vadd.f32 %v2605_v20, %v2604_v29  ;;  %v827_v42 = vadd.f32 %v2607_v19, %v2606_v35  ;;  %v2611_v41 = vld [vmem:[#allocation36_spill] sm:$0xff]  ;;  %v2613_v38 = vld [vmem:[#allocation37_spill] sm:$0xff]  ;;  %v2614_v62 = vld [vmem:[#allocation15_spill] sm:$0xff] }
 0x108   :  { %v828_v54 = vadd.f32 %v2609_v31, %v2608_v26  ;;  %v374_v12 = vadd.f32 %v352_v52, %v278_v24  ;;  %v375_v49 = vadd.f32 %v353_v25, %v279_v57  ;;  %v829_v51 = vadd.f32 %v807_v40, %v777_v2  ;;  %v2615_v29 = vld [vmem:[#allocation38_spill] sm:$0xff]  ;;  %v2617_v35 = vld [vmem:[#allocation39_spill] sm:$0xff] }
 0x109   :  { %v830_v23 = vadd.f32 %v808_v58, %v778_v4  ;;  %v412_v13 = vpop.permute.xlu1 %411  ;;  %v376_v34 = vadd.f32 %v2611_v41, %v2610_v45  ;;  %v377_v63 = vadd.f32 %v2613_v38, %v2612_v14  ;;  %v831_v20 = vadd.f32 %v2615_v29, %v2614_v62  ;;  %v2619_v24 = vld [vmem:[#allocation6_spill] sm:$0xff] }
 0x10a   :  { %v832_v19 = vadd.f32 %v2617_v35, %v2616_v16  ;;  %v2024_v26 = vadd.f32 %v2618_v15, %v374_v12  ;;  %v2027_v57 = vadd.f32 %v2619_v24, %v375_v49  ;;  %v2030_v2 = vadd.f32 %v1922_v21, %v829_v51 }
 0x10b   :  { %v2033_v4 = vadd.f32 %v1926_v0, %v830_v23  ;;  %v446_v52 = vmul.f32 %v1506_v43, %v412_v13  ;;  %v447_v25 = vmul.f32 %v1509_v8, %v412_v13  ;;  %v857_v40 = vmul.f32 %v1469_v50, %v412_v13 }
 0x10c   :  { %v858_v16 = vmul.f32 %v1472_v47, %v412_v13  ;;  %v502_v15 = vmax.f32 %v500_v33, %v2024_v26  ;;  %v521_v58 = vmax.f32 %v519_v1, %v2027_v57  ;;  %v911_v31 = vmax.f32 %v909_v61, %v2030_v2 }
 0x10d   :  { %v929_v21 = vmax.f32 %v927_v39, %v2033_v4  ;;  %v2043_v12 = vadd.f32 %v446_v52, %v372_v36  ;;  %v2045_v0 = vadd.f32 %v447_v25, %v373_v5  ;;  %v2047_v49 = vadd.f32 %v857_v40, %v827_v42  ;;  %v420_v23 = vpop.permute.xlu1 %419 }
 0x10e   :  { %v2049_v51 = vadd.f32 %v858_v16, %v828_v54  ;;  %v450_v45 = vmul.f32 %v1506_v43, %v420_v23  ;;  %v451_v13 = vmul.f32 %v1509_v8, %v420_v23  ;;  %v861_v33 = vmul.f32 %v1469_v50, %v420_v23  ;;  %v2621_v8 = vld [vmem:[#allocation2_spill] sm:$0xff] }
 0x10f   :  { %v862_v1 = vmul.f32 %v1472_v47, %v420_v23  ;;  %v501_v61 = vmax.f32 %v499_v6, %v2043_v12  ;;  %v520_v39 = vmax.f32 %v518_v22, %v2045_v0  ;;  %v910_v36 = vmax.f32 %v908_v56, %v2047_v49 }
 0x110   :  { %v928_v5 = vmax.f32 %v926_v59, %v2049_v51  ;;  %v2059_v42 = vadd.f32 %v450_v45, %v376_v34  ;;  %v2061_v54 = vadd.f32 %v451_v13, %v377_v63  ;;  %v2063_v41 = vadd.f32 %v861_v33, %v831_v20 }
 0x111   :  { %v2065_v43 = vadd.f32 %v862_v1, %v832_v19  ;;  %v27_v50 = vadd.s32 16, %v2621_v8  ;;  %v28_v47 = vadd.s32 24, %v2621_v8  ;;  %v29_v6 = vadd.s32 32, %v2621_v8  ;;  %v2622_v19 = vld [vmem:[#allocation23_spill] sm:$0xff] }
 0x112   :  { %v504_v22 = vsel %vm2512_vm1, %v2059_v42, -inf  ;;  %v522_v56 = vsel %vm2512_vm1, %v2061_v54, -inf  ;;  %v912_v59 = vsel %vm2512_vm1, %v2063_v41, -inf  ;;  %v30_v29 = vadd.s32 40, %v2621_v8 }
 0x113   :  { %2620 = vst [vmem:[#allocation35_spill] sm:$0xff] %v2065_v43  ;;  %v930_v34 = vsel %vm2512_vm1, %v2065_v43, -inf  ;;  %v505_v14 = vmax.f32 %v501_v61, %v504_v22  ;;  %v523_v38 = vmax.f32 %v520_v39, %v522_v56  ;;  %v913_v63 = vmax.f32 %v910_v36, %v912_v59 }
 0x114   :  { %v931_v62 = vmax.f32 %v928_v5, %v930_v34  ;;  %v31_v20 = vadd.s32 48, %v2621_v8  ;;  %v2081_v35 = vrot.slane %v2621_v8, 4  ;;  %v554_v24 = vrot.slane %v2622_v19, 4  ;;  %v2623_v34 = vld [vmem:[#allocation29_spill] sm:$0xff] }
 0x115   :  { %v506_v52 = vmax.f32 %v505_v14, %v502_v15  ;;  %v524_v25 = vmax.f32 %v523_v38, %v521_v58  ;;  %v914_v40 = vmax.f32 %v913_v63, %v911_v31  ;;  %v32_v23 = vadd.s32 56, %v2621_v8 }
 0x116   :  { %v932_v16 = vmax.f32 %v931_v62, %v929_v21  ;;  %v33_v45 = vadd.s32 64, %v2621_v8  ;;  %v556_v13 = vrot.slane %v27_v50, 4  ;;  %v558_v33 = vrot.slane %v28_v47, 4  ;;  %v2624_v50 = vld [vmem:[#allocation30_spill] sm:$0xff] }
 0x117   :  { %v507_v1 = vrot.slane %v506_v52, 4  ;;  %v525_v61 = vrot.slane %v524_v25, 4  ;;  %v915_v39 = vrot.slane %v914_v40, 4  ;;  %v34_v5 = vadd.s32 72, %v2621_v8 }
 0x118   :  { %v933_v36 = vrot.slane %v932_v16, 4  ;;  %v2089_v22 = vsel %vm2512_vm1, %v2081_v35, %v554_v24  ;;  %v560_v15 = vrot.slane %v29_v6, 4  ;;  %v562_v58 = vrot.slane %v30_v29, 4 }
 0x119   :  { %v508_v31 = vmax.f32 %v506_v52, %v507_v1  ;;  %v526_v21 = vmax.f32 %v524_v25, %v525_v61  ;;  %v916_v56 = vmax.f32 %v914_v40, %v915_v39  ;;  %v476_v14 = vrot.slane %v2623_v34, 2 }
 0x11a   :  { %v934_v59 = vmax.f32 %v932_v16, %v933_v36  ;;  %v477_v47 = vrot.slane %v2624_v50, 2  ;;  %v2094_v38 = vsel %vm2512_vm1, %v554_v24, %v556_v13  ;;  %v2097_v63 = vsel %vm2512_vm1, %v556_v13, %v558_v33 }
 0x11b   :  { %v509_v8 = vrot.slane %v508_v31, 2  ;;  %v527_v62 = vrot.slane %v526_v21, 2  ;;  %v917_v19 = vrot.slane %v916_v56, 2  ;;  %v564_v6 = vrot.slane %v31_v20, 4 }
 0x11c   :  { %v935_v43 = vrot.slane %v934_v59, 2  ;;  %v566_v29 = vrot.slane %v32_v23, 4  ;;  %v568_v52 = vrot.slane %v33_v45, 4  ;;  %v2099_v25 = vrot.slane %v34_v5, 4 }
 0x11d   :  { %v510_v40 = vmax.f32 %v508_v31, %v509_v8  ;;  %v528_v16 = vmax.f32 %v526_v21, %v527_v62  ;;  %v918_v1 = vmax.f32 %v916_v56, %v917_v19  ;;  %v2102_v39 = vadd.f32 %v476_v14, %v2623_v34 }
 0x11e   :  { %v936_v61 = vmax.f32 %v934_v59, %v935_v43  ;;  %v2105_v24 = vadd.f32 %v477_v47, %v2624_v50  ;;  %v2108_v13 = vsel %vm2512_vm1, %v558_v33, %v560_v15  ;;  %v2111_v36 = vsel %vm2512_vm1, %v560_v15, %v562_v58 }
 0x11f   :  { %v511_v20 = vrot.slane %v510_v40, 1  ;;  %v529_v23 = vrot.slane %v528_v16, 1  ;;  %v919_v45 = vrot.slane %v918_v1, 1  ;;  %v2114_v31 = vsel %vm2512_vm1, %v562_v58, %v564_v6 }
 0x120   :  { %v937_v5 = vrot.slane %v936_v61, 1  ;;  %v2117_v43 = vsel %vm2512_vm1, %v564_v6, %v566_v29  ;;  %v2120_v21 = vsel %vm2512_vm1, %v566_v29, %v568_v52  ;;  %v2124_v33 = vsel %vm2512_vm1, %v568_v52, %v2099_v25  ;;  %v2627_v29 = vld [vmem:[#allocation27_spill] sm:$0xff]  ;;  %v2628_v52 = vld [vmem:[#allocation28_spill] sm:$0xff] }
 0x121   :  { %v2127_v15 = vsub.f32 %v2623_v34, %v476_v14  ;;  %v2130_v56 = vsub.f32 %v2624_v50, %v477_v47  ;;  %v2132_v59 = vmax.f32 %v510_v40, %v511_v20  ;;  %v2134_v58 = vmax.f32 %v528_v16, %v529_v23  ;;  %v2625_v14 = vld [vmem:[#allocation31_spill] sm:$0xff]  ;;  %v2626_v47 = vld [vmem:[#allocation32_spill] sm:$0xff] }
 0x122   :  { %v2138_v19 = vmax.f32 %v918_v1, %v919_v45  ;;  %v2140_v6 = vmax.f32 %v936_v61, %v937_v5 }
 0x123   :  { %vm531_vm2 = vcmp.ge.f32.partialorder %v2623_v34, %v2132_v59  ;;  %vm532_vm3 = vcmp.ge.f32.partialorder %v2624_v50, %v2134_v58  ;;  %vm533_vm4 = vcmp.ge.f32.partialorder %v1787_v27, %v2132_v59  ;;  %vm534_vm5 = vcmp.ge.f32.partialorder %v1789_v32, %v2134_v58 }
 0x124   :  { %vm535_vm6 = vcmp.ge.f32.partialorder %v2625_v14, %v2132_v59  ;;  %vm536_vm7 = vcmp.ge.f32.partialorder %v2626_v47, %v2134_v58  ;;  %vm537_vm8 = vcmp.ge.f32.partialorder %v1797_v7, %v2132_v59  ;;  %vm538_vm9 = vcmp.ge.f32.partialorder %v1799_v48, %v2134_v58 }
 0x125   :  { %vm539_vm10 = vcmp.ge.f32.partialorder %v2627_v29, %v2132_v59  ;;  %vm546_vm0 = vcmp.ge.f32.partialorder %v1953_v3, %v2134_v58  ;;  %vm547_vm11 = vcmp.ge.f32.partialorder %v2043_v12, %v2132_v59  ;;  %vm548_vm12 = vcmp.ge.f32.partialorder %v2045_v0, %v2134_v58 }
 0x126   :  { %vm549_vm13 = vcmp.ge.f32.partialorder %v2024_v26, %v2132_v59  ;;  %vm550_vm14 = vcmp.ge.f32.partialorder %v2027_v57, %v2134_v58  ;;  %vm551_vm15 = vcmp.ge.f32.partialorder %v2059_v42, %v2132_v59  ;;  %vm552_vm1 = vcmp.ge.f32.partialorder %v2061_v54, %v2134_v58 }
 0x127   :  { %v572_v40 = vsel %vm531_vm2, %v2081_v35, 80  ;;  %v573_v16 = vsel %vm532_vm3, %v2081_v35, 80  ;;  %v574_v1 = vsel %vm533_vm4, %v2089_v22, 80  ;;  %v575_v61 = vsel %vm534_vm5, %v2089_v22, 80 }
 0x128   :  { %v576_v34 = vsel %vm535_vm6, %v2094_v38, 80  ;;  %v577_v50 = vsel %vm536_vm7, %v2094_v38, 80  ;;  %v578_v27 = vsel %vm537_vm8, %v2097_v63, 80  ;;  %v579_v32 = vsel %vm538_vm9, %v2097_v63, 80 }
 0x129   :  { %v580_v20 = vsel %vm539_vm10, %v2108_v13, 80  ;;  %vm2629_vm2 = vcmp.ge.f32.partialorder %v2628_v52, %v2134_v58  ;;  %vm2630_vm3 = vcmp.ge.f32.partialorder %v1942_v9, %v2132_v59  ;;  %vm2631_vm4 = vcmp.ge.f32.partialorder %v1944_v53, %v2134_v58 }
 0x12a   :  { %v581_v23 = vsel %vm2629_vm2, %v2108_v13, 80  ;;  %v582_v7 = vsel %vm2630_vm3, %v2111_v36, 80  ;;  %v583_v48 = vsel %vm2631_vm4, %v2111_v36, 80  ;;  %vm2632_vm5 = vcmp.ge.f32.partialorder %v1983_v60, %v2132_v59 }
 0x12b   :  { %v584_v45 = vsel %vm2632_vm5, %v2114_v31, 80  ;;  %vm2633_vm6 = vcmp.ge.f32.partialorder %v1985_v17, %v2134_v58  ;;  %vm2634_vm7 = vcmp.ge.f32.partialorder %v1951_v10, %v2132_v59  ;;  %v587_v53 = vsel %vm546_vm0, %v2117_v43, 80 }
 0x12c   :  { %v585_v5 = vsel %vm2633_vm6, %v2114_v31, 80  ;;  %v586_v9 = vsel %vm2634_vm7, %v2117_v43, 80  ;;  %v588_v60 = vsel %vm547_vm11, %v2120_v21, 80  ;;  %v589_v17 = vsel %vm548_vm12, %v2120_v21, 80 }
 0x12d   :  { %v590_v10 = vsel %vm549_vm13, %v2124_v33, 80  ;;  %v591_v3 = vsel %vm550_vm14, %v2124_v33, 80  ;;  %v592_v12 = vsel %vm551_vm15, %v2099_v25, 80  ;;  %v593_v0 = vsel %vm552_vm1, %v2099_v25, 80 }
 0x12e   :  { %vm2635_vm0 = vcmask 1047556   ;;  %vm597_vm8 = vcmp.lt.s32.totalorder %v574_v1, %v578_v27  ;;  %vm2636_vm9 = vcmask 1043456   ;;  %vm628_vm13 = vcmp.lt.s32.totalorder %v575_v61, %v579_v32 }
 0x12f   :  { %v594_v14 = vsel %vm2635_vm0, %v572_v40, 2147483647  ;;  %v611_v26 = vsel %vm2636_vm9, %v592_v12, 2147483647  ;;  %vm2637_vm10 = vmmov %vm2635_vm0  ;;  %v598_v57 = vsel %vm597_vm8, %v574_v1, %v578_v27  ;;  %v629_v52 = vsel %vm628_vm13, %v575_v61, %v579_v32 }
 0x130   :  { %v625_v47 = vsel %vm2637_vm10, %v573_v16, 2147483647  ;;  %vm595_vm11 = vcmp.lt.s32.totalorder %v594_v14, %v576_v34  ;;  %vm601_vm14 = vcmp.lt.s32.totalorder %v598_v57, %v582_v7  ;;  %vm632_vm3 = vcmp.lt.s32.totalorder %v629_v52, %v583_v48 }
 0x131   :  { %vm626_vm12 = vcmp.lt.s32.totalorder %v625_v47, %v577_v50  ;;  %v596_v29 = vsel %vm595_vm11, %v594_v14, %v576_v34  ;;  %v602_v62 = vsel %vm601_vm14, %v598_v57, %v582_v7  ;;  %v633_v8 = vsel %vm632_vm3, %v629_v52, %v583_v48  ;;  %v2641_v48 = vld [vmem:[#allocation33_spill] sm:$0xff] }
 0x132   :  { %v627_v42 = vsel %vm626_vm12, %v625_v47, %v577_v50  ;;  %vm599_vm15 = vcmp.lt.s32.totalorder %v596_v29, %v580_v20  ;;  %vm605_vm1 = vcmp.lt.s32.totalorder %v602_v62, %v586_v9  ;;  %vm636_vm6 = vcmp.lt.s32.totalorder %v633_v8, %v587_v53 }
 0x133   :  { %vm630_vm2 = vcmp.lt.s32.totalorder %v627_v42, %v581_v23  ;;  %v600_v54 = vsel %vm599_vm15, %v596_v29, %v580_v20  ;;  %v606_v12 = vsel %vm605_vm1, %v602_v62, %v586_v9  ;;  %v637_v27 = vsel %vm636_vm6, %v633_v8, %v587_v53  ;;  %v2639_v62 = vld [vmem:[#allocation20_spill] sm:$0xff] }
 0x134   :  { %v631_v40 = vsel %vm630_vm2, %v627_v42, %v581_v23  ;;  %vm603_vm4 = vcmp.lt.s32.totalorder %v600_v54, %v584_v45  ;;  %vm609_vm7 = vcmp.lt.s32.totalorder %v606_v12, %v590_v10  ;;  %vm490_vm0 = vcmask 1041408   ;;  %v2640_v23 = vld [vmem:[#allocation21_spill] sm:$0xff] }
 0x135   :  { %vm634_vm5 = vcmp.lt.s32.totalorder %v631_v40, %v585_v5  ;;  %v604_v16 = vsel %vm603_vm4, %v600_v54, %v584_v45  ;;  %v610_v34 = vsel %vm609_vm7, %v606_v12, %v590_v10  ;;  %vm640_vm10 = vcmp.lt.s32.totalorder %v637_v27, %v591_v3  ;;  %v2642_v45 = vld [vmem:[#allocation34_spill] sm:$0xff]  ;;  %v2644_v10 = vld [vmem:[#allocation19_spill] sm:$0xff] }
 0x136   :  { %v635_v1 = vsel %vm634_vm5, %v631_v40, %v585_v5  ;;  %vm607_vm8 = vcmp.lt.s32.totalorder %v604_v16, %v588_v60  ;;  %v641_v32 = vsel %vm640_vm10, %v637_v27, %v591_v3  ;;  %vm2638_vm11 = vcmask 1043456   ;;  %v2645_v3 = vld [vmem:[#allocation26_spill] sm:$0xff]  ;;  %v2649_v40 = vld [vmem:[#allocation35_spill] sm:$0xff] }
 0x137   :  { %vm638_vm9 = vcmp.lt.s32.totalorder %v635_v1, %v589_v17  ;;  %v608_v61 = vsel %vm607_vm8, %v604_v16, %v588_v60  ;;  %v642_v20 = vsel %vm2638_vm11, %v593_v0, 2147483647  ;;  %vm939_vm14 = vcmp.ge.f32.partialorder %v2639_v62, %v2138_v19  ;;  %v2646_v0 = vld [vmem:[#allocation17_spill] sm:$0xff] }
 0x138   :  { %v639_v50 = vsel %vm638_vm9, %v635_v1, %v589_v17  ;;  %vm612_vm12 = vcmp.lt.s32.totalorder %v608_v61, %v611_v26  ;;  %vm940_vm15 = vcmp.ge.f32.partialorder %v2640_v23, %v2140_v6  ;;  %vm941_vm2 = vcmp.ge.f32.partialorder %v1792_v11, %v2138_v19  ;;  %v2643_v17 = vld [vmem:[#allocation18_spill] sm:$0xff] }
 0x139   :  { %vm643_vm13 = vcmp.lt.s32.totalorder %v639_v50, %v642_v20  ;;  %v613_v7 = vsel %vm612_vm12, %v608_v61, %v611_v26  ;;  %vm942_vm3 = vcmp.ge.f32.partialorder %v1795_v28, %v2140_v6  ;;  %vm943_vm5 = vcmp.ge.f32.partialorder %v2641_v48, %v2138_v19 }
 0x13a   :  { %v644_v8 = vsel %vm643_vm13, %v639_v50, %v642_v20  ;;  %vm614_vm1 = vcmp.lt.s32.totalorder %v613_v7, %v610_v34  ;;  %vm944_vm6 = vcmp.ge.f32.partialorder %v2642_v45, %v2140_v6  ;;  %vm949_vm11 = vcmp.ge.f32.partialorder %v1946_v37, %v2138_v19 }
 0x13b   :  { %vm645_vm4 = vcmp.lt.s32.totalorder %v644_v8, %v641_v32  ;;  %v615_v5 = vsel %vm614_vm1, %v613_v7, %v610_v34  ;;  %vm954_vm10 = vcmp.ge.f32.partialorder %v2646_v0, %v2140_v6  ;;  %vm955_vm12 = vcmp.ge.f32.partialorder %v2047_v49, %v2138_v19 }
 0x13c   :  { %v646_v9 = vsel %vm645_vm4, %v644_v8, %v641_v32  ;;  %v616_v53 = vrot.slane %v615_v5, 4  ;;  %vm956_vm13 = vcmp.ge.f32.partialorder %v2049_v51, %v2140_v6  ;;  %vm957_vm1 = vcmp.ge.f32.partialorder %v2030_v2, %v2138_v19 }
 0x13d   :  { %v647_v60 = vrot.slane %v646_v9, 4  ;;  %v2647_v29 = vrot.slane %v2102_v39, 6  ;;  %v2648_v52 = vrot.slane %v2105_v24, 6  ;;  %v961_v39 = vsel %vm939_vm14, %v2081_v35, 80 }
 0x13e   :  { %vm617_vm4 = vcmp.lt.s32.totalorder %v615_v5, %v616_v53  ;;  %v962_v24 = vsel %vm940_vm15, %v2081_v35, 80  ;;  %v963_v12 = vsel %vm941_vm2, %v2089_v22, 80  ;;  %v964_v16 = vsel %vm942_vm3, %v2089_v22, 80 }
 0x13f   :  { %vm648_vm8 = vcmp.lt.s32.totalorder %v646_v9, %v647_v60  ;;  %v618_v14 = vsel %vm617_vm4, %v615_v5, %v616_v53  ;;  %v2322_v42 = vsel %vm490_vm0, %v2127_v15, %v2647_v29  ;;  %v2328_v54 = vsel %vm490_vm0, %v2130_v56, %v2648_v52 }
 0x140   :  { %v649_v26 = vsel %vm648_vm8, %v646_v9, %v647_v60  ;;  %v619_v47 = vrot.slane %v618_v14, 2  ;;  %vm959_vm8 = vcmp.ge.f32.partialorder %v2063_v41, %v2138_v19  ;;  %vm960_vm4 = vcmp.ge.f32.partialorder %v2649_v40, %v2140_v6 }
 0x141   :  { %v650_v57 = vrot.slane %v649_v26, 2  ;;  %v965_v34 = vsel %vm943_vm5, %v2094_v38, 80  ;;  %v966_v35 = vsel %vm944_vm6, %v2094_v38, 80  ;;  %vm2650_vm14 = vcmp.ge.f32.partialorder %v1802_v55, %v2138_v19 }
 0x142   :  { %vm620_vm7 = vcmp.lt.s32.totalorder %v618_v14, %v619_v47  ;;  %v967_v11 = vsel %vm2650_vm14, %v2097_v63, 80  ;;  %vm2651_vm15 = vcmp.ge.f32.partialorder %v1805_v30, %v2140_v6  ;;  %vm2652_vm2 = vcmp.ge.f32.partialorder %v2643_v17, %v2138_v19 }
 0x143   :  { %vm651_vm9 = vcmp.lt.s32.totalorder %v649_v26, %v650_v57  ;;  %v621_v15 = vsel %vm620_vm7, %v618_v14, %v619_v47  ;;  %v968_v28 = vsel %vm2651_vm15, %v2097_v63, 80  ;;  %v969_v22 = vsel %vm2652_vm2, %v2108_v13, 80 }
 0x144   :  { %v652_v56 = vsel %vm651_vm9, %v649_v26, %v650_v57  ;;  %v622_v1 = vrot.slane %v621_v15, 1  ;;  %vm2653_vm3 = vcmp.ge.f32.partialorder %v2644_v10, %v2140_v6  ;;  %v971_v55 = vsel %vm949_vm11, %v2111_v36, 80 }
 0x145   :  { %v653_v27 = vrot.slane %v652_v56, 1  ;;  %v970_v38 = vsel %vm2653_vm3, %v2108_v13, 80  ;;  %vm2654_vm7 = vcmp.ge.f32.partialorder %v1949_v46, %v2140_v6  ;;  %vm2655_vm9 = vcmp.ge.f32.partialorder %v1987_v18, %v2138_v19 }
 0x146   :  { %vm623_vm5 = vcmp.lt.s32.totalorder %v621_v15, %v622_v1  ;;  %v972_v30 = vsel %vm2654_vm7, %v2111_v36, 80  ;;  %v973_v50 = vsel %vm2655_vm9, %v2114_v31, 80  ;;  %vm2656_vm14 = vcmp.ge.f32.partialorder %v1989_v44, %v2140_v6 }
 0x147   :  { %vm654_vm6 = vcmp.lt.s32.totalorder %v652_v56, %v653_v27  ;;  %v624_v63 = vsel %vm623_vm5, %v621_v15, %v622_v1  ;;  %v974_v13 = vsel %vm2656_vm14, %v2114_v31, 80  ;;  %vm2657_vm11 = vcmp.ge.f32.partialorder %v2645_v3, %v2138_v19 }
 0x148   :  { %v655_v61 = vsel %vm654_vm6, %v652_v56, %v653_v27  ;;  %v656_v32 = vcvt.s32.f32 %v624_v63  ;;  %v975_v46 = vsel %vm2657_vm11, %v2117_v43, 80  ;;  %v976_v36 = vsel %vm954_vm10, %v2117_v43, 80 }
 0x149   :  { %v657_v37 = vcvt.s32.f32 %v655_v61  ;;  %v977_v18 = vsel %vm955_vm12, %v2120_v21, 80  ;;  %v978_v44 = vsel %vm956_vm13, %v2120_v21, 80  ;;  %v979_v31 = vsel %vm957_vm1, %v2124_v33, 80 }
 0x14a   :  { %v981_v43 = vsel %vm959_vm8, %v2099_v25, 80  ;;  %v658_v20 = vmul.f32 640.0, %v656_v32  ;;  %vm2658_vm10 = vcmask 1040384   ;;  %v982_v2 = vsel %vm960_vm4, %v2099_v25, 80 }
 0x14b   :  { %v659_v7 = vmul.f32 640.0, %v657_v37  ;;  %v671_v49 = vsel %vm2658_vm10, %v2132_v59, %v656_v32  ;;  %vm2659_vm12 = vmmov %vm2658_vm10  ;;  %vm2660_vm13 = vcmask 1047556   ;;  %vm986_vm1 = vcmp.lt.s32.totalorder %v963_v12, %v967_v11 }
 0x14c   :  { %v672_v8 = vsel %vm2659_vm12, %v2134_v58, %v657_v37  ;;  %675 = vst [vmem:[%s2476_s2 + $0x10] sm:$0x3] %v671_v49  ;;  %v983_v51 = vsel %vm2660_vm13, %v961_v39, 2147483647  ;;  %vm2661_vm8 = vmmov %vm2660_vm13  ;;  %v660_v21 = vadd.f32 %v658_v20, %v2322_v42  ;;  %v987_v58 = vsel %vm986_vm1, %v963_v12, %v967_v11 }
 0x14d   :  { %676 = vst [vmem:[%s2476_s2 + $0x18] sm:$0x3] %v672_v8  ;;  %v1014_v41 = vsel %vm2661_vm8, %v962_v24, 2147483647  ;;  %v661_v59 = vadd.f32 %v659_v7, %v2328_v54  ;;  %vm984_vm15 = vcmp.lt.s32.totalorder %v983_v51, %v965_v34  ;;  %vm990_vm2 = vcmp.lt.s32.totalorder %v987_v58, %v971_v55 }
 0x14e   :  { %v985_v48 = vsel %vm984_vm15, %v983_v51, %v965_v34  ;;  %vm1015_vm3 = vcmp.lt.s32.totalorder %v1014_v41, %v966_v35  ;;  %vm1017_vm5 = vcmp.lt.s32.totalorder %v964_v16, %v968_v28  ;;  %v664_v45 = vrot.slane %v660_v21, 4 }
 0x14f   :  { %v665_v5 = vrot.slane %v661_v59, 4  ;;  %vm988_vm6 = vcmp.lt.s32.totalorder %v985_v48, %v969_v22  ;;  %v991_v9 = vsel %vm990_vm2, %v987_v58, %v971_v55  ;;  %v1016_v53 = vsel %vm1015_vm3, %v1014_v41, %v966_v35 }
 0x150   :  { %v989_v25 = vsel %vm988_vm6, %v985_v48, %v969_v22  ;;  %vm994_vm4 = vcmp.lt.s32.totalorder %v991_v9, %v975_v46  ;;  %v1018_v60 = vsel %vm1017_vm5, %v964_v16, %v968_v28  ;;  %vm2662_vm7 = vcmask 1043456  }
 0x151   :  { %v668_v17 = vsel %vm2662_vm7, %v2322_v42, %v664_v45  ;;  %vm2663_vm9 = vmmov %vm2662_vm7  ;;  %vm992_vm14 = vcmp.lt.s32.totalorder %v989_v25, %v973_v50  ;;  %v995_v3 = vsel %vm994_vm4, %v991_v9, %v975_v46  ;;  %vm1019_vm10 = vcmp.lt.s32.totalorder %v1016_v53, %v970_v38 }
 0x152   :  { %v669_v10 = vsel %vm2663_vm9, %v2328_v54, %v665_v5  ;;  %673 = vst [vmem:[%s2476_s2] sm:$0xff] %v668_v17  ;;  %v993_v0 = vsel %vm992_vm14, %v989_v25, %v973_v50  ;;  %vm998_vm11 = vcmp.lt.s32.totalorder %v995_v3, %v979_v31  ;;  %vm1021_vm12 = vcmp.lt.s32.totalorder %v1018_v60, %v972_v30  ;;  %vm2664_vm1 = vmmov %vm2662_vm7 }
 0x153   :  { %674 = vst [vmem:[%s2476_s2 + $0x8] sm:$0xff] %v669_v10  ;;  %vm996_vm13 = vcmp.lt.s32.totalorder %v993_v0, %v977_v18  ;;  %v999_v14 = vsel %vm998_vm11, %v995_v3, %v979_v31  ;;  %v1020_v26 = vsel %vm1019_vm10, %v1016_v53, %v970_v38  ;;  %v1022_v47 = vsel %vm1021_vm12, %v1018_v60, %v972_v30  ;;  %vm2666_vm7 = vmmov %vm2664_vm1 }
 0x154   :  { %v997_v57 = vsel %vm996_vm13, %v993_v0, %v977_v18  ;;  %v1000_v29 = vsel %vm2664_vm1, %v981_v43, 2147483647  ;;  %vm1023_vm8 = vcmp.lt.s32.totalorder %v1020_v26, %v974_v13  ;;  %vm1025_vm15 = vcmp.lt.s32.totalorder %v1022_v47, %v976_v36 }
 0x155   :  { %vm2665_vm2 = vcmp.ge.f32.partialorder %v2033_v4, %v2140_v6  ;;  %vm1001_vm3 = vcmp.lt.s32.totalorder %v997_v57, %v1000_v29  ;;  %v1024_v52 = vsel %vm1023_vm8, %v1020_v26, %v974_v13  ;;  %v1026_v54 = vsel %vm1025_vm15, %v1022_v47, %v976_v36 }
 0x156   :  { %v980_v42 = vsel %vm2665_vm2, %v2124_v33, 80  ;;  %v1002_v40 = vsel %vm1001_vm3, %v997_v57, %v1000_v29  ;;  %vm1027_vm5 = vcmp.lt.s32.totalorder %v1024_v52, %v978_v44  ;;  %v1031_v15 = vsel %vm2666_vm7, %v982_v2, 2147483647  ;;  %vm2669_vm3 = vmmov %vm2666_vm7 }
 0x157   :  { %vm1029_vm6 = vcmp.lt.s32.totalorder %v1026_v54, %v980_v42  ;;  %vm1003_vm4 = vcmp.lt.s32.totalorder %v1002_v40, %v999_v14  ;;  %v1028_v39 = vsel %vm1027_vm5, %v1024_v52, %v978_v44  ;;  %v887_v4 = vrot.slane %v2639_v62, 2  ;;  %vm2670_vm5 = vmmov %vm2669_vm3 }
 0x158   :  { %v1030_v24 = vsel %vm1029_vm6, %v1026_v54, %v980_v42  ;;  %v1004_v56 = vsel %vm1003_vm4, %v1002_v40, %v999_v14  ;;  %vm1032_vm9 = vcmp.lt.s32.totalorder %v1028_v39, %v1031_v15  ;;  %v888_v35 = vrot.slane %v2640_v23, 2 }
 0x159   :  { %v1005_v12 = vrot.slane %v1004_v56, 4  ;;  %v1033_v16 = vsel %vm1032_vm9, %v1028_v39, %v1031_v15  ;;  %v893_v28 = vadd.f32 %v887_v4, %v2639_v62  ;;  %v891_v37 = vsub.f32 %v2639_v62, %v887_v4 }
 0x15a   :  { %vm1034_vm14 = vcmp.lt.s32.totalorder %v1033_v16, %v1030_v24  ;;  %v894_v30 = vadd.f32 %v888_v35, %v2640_v23  ;;  %vm2667_vm15 = vcmask 1040384   ;;  %v892_v20 = vsub.f32 %v2640_v23, %v888_v35 }
 0x15b   :  { %vm1006_vm11 = vcmp.lt.s32.totalorder %v1004_v56, %v1005_v12  ;;  %v1035_v1 = vsel %vm1034_vm14, %v1033_v16, %v1030_v24  ;;  %v897_v61 = vrot.slane %v893_v28, 6  ;;  %vm2668_vm2 = vmmov %vm2667_vm15 }
 0x15c   :  { %v1007_v33 = vsel %vm1006_vm11, %v1004_v56, %v1005_v12  ;;  %v1036_v27 = vrot.slane %v1035_v1, 4  ;;  %v898_v46 = vrot.slane %v894_v30, 6 }
 0x15d   :  { %v1008_v34 = vrot.slane %v1007_v33, 2  ;;  %v901_v31 = vsel %vm490_vm0, %v891_v37, %v897_v61 }
 0x15e   :  { %vm1037_vm10 = vcmp.lt.s32.totalorder %v1035_v1, %v1036_v27  ;;  %v902_v8 = vsel %vm490_vm0, %v892_v20, %v898_v46 }
 0x15f   :  { %vm1009_vm12 = vcmp.lt.s32.totalorder %v1007_v33, %v1008_v34  ;;  %v1038_v11 = vsel %vm1037_vm10, %v1035_v1, %v1036_v27 }
 0x160   :  { %v1010_v22 = vsel %vm1009_vm12, %v1007_v33, %v1008_v34  ;;  %v1039_v38 = vrot.slane %v1038_v11, 2 }
 0x161   :  { %v1011_v55 = vrot.slane %v1010_v22, 1 }
 0x162   :  { %vm1040_vm13 = vcmp.lt.s32.totalorder %v1038_v11, %v1039_v38 }
 0x163   :  { %vm1012_vm1 = vcmp.lt.s32.totalorder %v1010_v22, %v1011_v55  ;;  %v1041_v63 = vsel %vm1040_vm13, %v1038_v11, %v1039_v38 }
 0x164   :  { %v1013_v50 = vsel %vm1012_vm1, %v1010_v22, %v1011_v55  ;;  %v1042_v13 = vrot.slane %v1041_v63, 1 }
 0x165   :  { %v1045_v32 = vcvt.s32.f32 %v1013_v50 }
 0x166   :  { %vm1043_vm8 = vcmp.lt.s32.totalorder %v1041_v63, %v1042_v13 }
 0x167   :  { %v1044_v36 = vsel %vm1043_vm8, %v1041_v63, %v1042_v13  ;;  %v1047_v18 = vmul.f32 640.0, %v1045_v32  ;;  %v1059_v44 = vsel %vm2667_vm15, %v2138_v19, %v1045_v32 }
 0x168   :  { %v1046_v43 = vcvt.s32.f32 %v1044_v36  ;;  %1072 = vst [vmem:[%s2476_s2 + $0x30] sm:$0x3] %v1059_v44 }
 0x169   :  { %v1049_v7 = vadd.f32 %v1047_v18, %v901_v31 }
 0x16a   :  { %v1048_v49 = vmul.f32 640.0, %v1046_v43  ;;  %v1060_v62 = vsel %vm2668_vm2, %v2140_v6, %v1046_v43 }
 0x16b   :  { %v1053_v2 = vrot.slane %v1049_v7, 4  ;;  %1073 = vst [vmem:[%s2476_s2 + $0x38] sm:$0x3] %v1060_v62 }
 0x16c   :  { %v1050_v19 = vadd.f32 %v1048_v49, %v902_v8 }
 0x16d   :  { %v1057_v51 = vsel %vm2669_vm3, %v901_v31, %v1053_v2 }
 0x16e   :  { %v1054_v41 = vrot.slane %v1050_v19, 4  ;;  %1070 = vst [vmem:[%s2476_s2 + $0x20] sm:$0xff] %v1057_v51 }
 0x170   :  { %v1058_v23 = vsel %vm2670_vm5, %v902_v8, %v1054_v41 }
 0x171   :  { %1071 = vst [vmem:[%s2476_s2 + $0x28] sm:$0xff] %v1058_v23 }

</bundles_post_ra>
